<compile_context>
chip_gen: v7x
topology: tpu7x:2x2x1
jax: 0.10.0
libtpu: 0.0.40
codegen_flags: <defaults>
</compile_context>

<pallas_src>
import functools
import math

import jax
import jax.numpy as jnp
from jax.experimental import pallas as pl
from jax.experimental.pallas import tpu as pltpu


# ------------------------------ kernel ------------------------------------ #
def _fourier_aug_kernel(p_ref, x_ref, c_ref, o_ref, *, num_comp, h, w):
    """One grid step processes TILE_BC image planes.

    p_ref : (1, TILE_BC*K, 3)  per-(plane, component) params
                               [a=2*pi*f*cos(phi) | b=2*pi*f*sin(phi) |
                                s=strength*eps_scale/(f_cut*p_cut)]
    x_ref : (1, TILE_BC, H*W)  lane-dense image planes
    c_ref : (H+W+1, H*W)       rows 0..H-1  : 0/1 row-broadcast matrix E_row
                               rows H..H+W-1: 0/1 col-broadcast matrix E_col
                               row  H+W     : meshgrid coord `lin` in cols 0..H-1
    o_ref : (1, TILE_BC, H*W)
    """
    k = num_comp
    hw = h * w
    tb = x_ref.shape[1]
    tbk = tb * k

    params = p_ref[0]                      # (tbk, 3)
    a = params[:, 0:1]                     # (tbk, 1)
    b = params[:, 1:2]
    s = params[:, 2:3]

    e_row = c_ref[0:h, :]                  # (h, hw)
    e_col = c_ref[h:h + w, :]              # (w, hw)
    lin = c_ref[h + w:h + w + 1, 0:h]      # (1, h)   (square image: h == w)

    # Separable factors:
    #   sin(a*u + b*v - pi/4) = sin(a*u)*cos(b*v - pi/4) + cos(a*u)*sin(b*v - pi/4)
    arg_r = a * lin                        # (tbk, h)
    arg_c = b * lin - (math.pi / 4.0)      # (tbk, w)
    sr = jnp.sin(arg_r)
    cr = jnp.cos(arg_r)
    sc = jnp.sin(arg_c)
    cc = jnp.cos(arg_c)

    # Squared Frobenius norm of each wave from length-h dot products:
    # ||sr⊗cc + cr⊗sc||^2 = (sr.sr)(cc.cc) + 2(sr.cr)(cc.sc) + (cr.cr)(sc.sc)
    sr2 = jnp.sum(sr * sr, axis=-1, keepdims=True)
    cr2 = jnp.sum(cr * cr, axis=-1, keepdims=True)
    src = jnp.sum(sr * cr, axis=-1, keepdims=True)
    cc2 = jnp.sum(cc * cc, axis=-1, keepdims=True)
    sc2 = jnp.sum(sc * sc, axis=-1, keepdims=True)
    csc = jnp.sum(cc * sc, axis=-1, keepdims=True)
    ssq = sr2 * cc2 + 2.0 * src * csc + cr2 * sc2
    coef = s * jax.lax.rsqrt(ssq)          # (tbk, 1)

    # Rank-2 expansion to lane-dense planes on the MXU: broadcast the row
    # factors across columns and the column factors across rows via constant
    # 0/1 selection matrices, multiply, and reduce over the 2K components.
    rfac = jnp.concatenate([coef * sr, coef * cr], axis=0)            # (2*tbk, h)
    cfac = jnp.concatenate([cc, sc], axis=0)                          # (2*tbk, w)
    r_exp = jnp.dot(rfac, e_row, preferred_element_type=jnp.float32)  # (2*tbk, hw)
    c_exp = jnp.dot(cfac, e_col, preferred_element_type=jnp.float32)  # (2*tbk, hw)
    prod = r_exp * c_exp
    per_comp = prod[0:tbk, :] + prod[tbk:2 * tbk, :]                  # (tbk, hw)
    aug = jnp.sum(per_comp.reshape(tb, k, hw), axis=1)                # (tb, hw)

    o_ref[0] = jnp.clip(x_ref[0] + aug, 0.0, 1.0)


# --------------------------- tiling heuristics ------------------------------ #
def _hardware_info():
    vmem_cap = 64 << 20          # conservative fallback (v7x per-TC size)
    num_cores = 1
    try:
        info = pltpu.get_tpu_info()
        vmem_cap = int(getattr(info, "vmem_capacity_bytes", vmem_cap) or vmem_cap)
        num_cores = int(getattr(info, "num_cores", 1) or 1)
    except Exception:
        pass
    try:
        num_cores = max(num_cores,
                        int(getattr(jax.devices()[0], "num_cores", 1) or 1))
    except Exception:
        pass
    return vmem_cap, num_cores


def _select_tile_bc(bc_pad, hw, num_comp, vmem_cap, num_cores):
    # Per-plane f32 VMEM bytes: double-buffered x + out blocks (4*hw) plus the
    # in-kernel expansion intermediates r_exp/c_exp/prod (3*2K*hw) plus slack
    # for the factor tables / accumulator.
    bytes_per_plane = 4 * hw * (6 + 6 * num_comp)
    budget = min(vmem_cap // 4, 32 << 20)
    cap = max(8, (budget // bytes_per_plane) // 8 * 8)
    tile = max(8, min(bc_pad, cap))
    tile -= tile % 8
    tile = max(tile, 8)
    while bc_pad % tile:                   # bc_pad is a multiple of 8 -> terminates
        tile -= 8
    # Split so both TensorCores get work only where a 2nd core exists (v7x);
    # on single-TC v5e/v6e extra grid steps are pure ~0.35us overhead.
    if (num_cores >= 2 and bc_pad // tile == 1 and bc_pad >= 16
            and (bc_pad // 2) % 8 == 0):
        tile = bc_pad // 2
    return tile


# ------------------------------ wrapper ------------------------------------ #
def general_fourier_online(x, freqs, phases, strengths, *, img_size,
                           f_cut, p_cut, eps_scale, tile_bc=None):
    """x: (b, c, h, w) f32 in [0, 1]; freqs (b,c,f_cut,1); phases/strengths
    (b,c,f_cut,p_cut).  Returns clamp(x + fourier aug, 0, 1), shape (b,c,h,w)."""
    b, c, h, w = x.shape
    assert h == img_size and w == img_size and h == w
    bc = b * c
    hw = h * w
    num_comp = f_cut * p_cut
    # Note: hw % 128 == 0 keeps output stores unmasked; other sizes are still
    # correct (masked lanes), just slower.

    # Merged per-(plane, component) parameter table: [a | b | s].
    two_pi_f = (2.0 * jnp.pi) * freqs                               # (b,c,f,1)
    a_t = (two_pi_f * jnp.cos(phases)).reshape(bc, num_comp)
    b_t = (two_pi_f * jnp.sin(phases)).reshape(bc, num_comp)
    s_t = (strengths * (eps_scale / float(num_comp))).reshape(bc, num_comp)
    params = jnp.stack([a_t, b_t, s_t], axis=-1).astype(jnp.float32)  # (bc,K,3)
    x_flat = x.reshape(bc, hw).astype(jnp.float32)

    # Pad the plane count to a multiple of 8 (f32 sublanes -> unmasked tiles).
    bc_pad = max(8, ((bc + 7) // 8) * 8)
    if bc_pad != bc:
        params = jnp.pad(params, ((0, bc_pad - bc), (0, 0), (0, 0)), mode="edge")
        x_flat = jnp.pad(x_flat, ((0, bc_pad - bc), (0, 0)))

    vmem_cap, num_cores = _hardware_info()
    if tile_bc is None:
        tile_bc = _select_tile_bc(bc_pad, hw, num_comp, vmem_cap, num_cores)
    assert bc_pad % tile_bc == 0
    g = bc_pad // tile_bc
    vmem_limit = int(min(vmem_cap // 2, 48 << 20))

    params = params.reshape(g, tile_bc * num_comp, 3)
    x_g = x_flat.reshape(g, tile_bc, hw)

    # Constant input: 0/1 row/col broadcast matrices + meshgrid coordinate row.
    e_row = jnp.kron(jnp.eye(h, dtype=jnp.float32),
                     jnp.ones((1, w), jnp.float32))                  # (h, hw)
    e_col = jnp.kron(jnp.ones((1, h), jnp.float32),
                     jnp.eye(w, dtype=jnp.float32))                  # (w, hw)
    lin = jnp.linspace(-img_size / 2.0, img_size / 2.0, img_size,
                       dtype=jnp.float32)
    lin_row = jnp.zeros((1, hw), jnp.float32).at[0, :h].set(lin)
    consts = jnp.concatenate([e_row, e_col, lin_row], axis=0)        # (h+w+1, hw)

    kernel = functools.partial(_fourier_aug_kernel, num_comp=num_comp, h=h, w=w)

    out = pl.pallas_call(
        kernel,
        grid=(g,),
        in_specs=[
            pl.BlockSpec((1, tile_bc * num_comp, 3), lambda i: (i, 0, 0)),
            pl.BlockSpec((1, tile_bc, hw), lambda i: (i, 0, 0)),
            pl.BlockSpec((h + w + 1, hw), lambda i: (0, 0)),
        ],
        out_specs=pl.BlockSpec((1, tile_bc, hw), lambda i: (i, 0, 0)),
        out_shape=jax.ShapeDtypeStruct((g, tile_bc, hw), jnp.float32),
        compiler_params=pltpu.CompilerParams(
            dimension_semantics=("parallel",),
            vmem_limit_bytes=vmem_limit),
    )(params, x_g, consts)

    out = out.reshape(bc_pad, hw)[:bc]
    return out.reshape(b, c, h, w)


# --------------------------- pure-JAX reference ---------------------------- #
def _reference(x, freqs, phases, strengths, *, img_size, f_cut, p_cut,
               eps_scale):
    lin = jnp.linspace(-img_size / 2.0, img_size / 2.0, img_size,
                       dtype=jnp.float32)
    xx, yy = jnp.meshgrid(lin, lin, indexing="ij")
    fr = freqs[..., None, None]                      # (b,c,f,1,1,1)
    ph = phases[..., None, None]                     # (b,c,f,p,1,1)
    waves = jnp.sin(2.0 * jnp.pi * fr *
                    (xx * jnp.cos(ph) + yy * jnp.sin(ph)) - jnp.pi / 4.0)
    norm = jnp.sqrt(jnp.sum(waves * waves, axis=(-2, -1), keepdims=True))
    waves = eps_scale * waves / norm
    aug = jnp.einsum("bcfp,bcfphw->bchw", strengths, waves)
    aug = aug / float(f_cut * p_cut)
    return jnp.clip(x + aug, 0.0, 1.0)


# ------------------------------- main -------------------------------------- #
if __name__ == "__main__":
    # Module hyper-parameters (from __init__).
    img_size = 16
    groups = [1, 2, 4]                      # cycles per image
    phase_range = (0.0, 1.0)
    f_cut, p_cut = 2, 2
    min_str, mean_str = 0.0, 5.0
    granularity = 64
    eps_scale = img_size / 32.0

    freq_table = jnp.asarray([grp / img_size for grp in groups],
                             dtype=jnp.float32)
    phase_table = -jnp.pi * jnp.linspace(phase_range[0], phase_range[1],
                                         granularity, dtype=jnp.float32)

    b, c, h, w = 2, 4, img_size, img_size

    key = jax.random.PRNGKey(0)
    kx, kf, kp, ks = jax.random.split(key, 4)

    x = jax.random.uniform(kx, (b, c, h, w), dtype=jnp.float32)

    # sample_f_p + strength sampling (host-side glue, matches torch semantics).
    # TODO(synk): the torch randint/exponential_ sampling itself stays outside
    # the kernel; only the deterministic forward math is a Pallas kernel.
    f_idx = jax.random.randint(kf, (b, c, f_cut, 1), 0, len(groups))
    p_idx = jax.random.randint(kp, (b, c, f_cut, p_cut), 0, granularity)
    freqs = freq_table[f_idx]                           # (b, c, f_cut, 1)
    phases = phase_table[p_idx]                         # (b, c, f_cut, p_cut)
    strengths = (jax.random.exponential(ks, (b, c, f_cut, p_cut),
                                        dtype=jnp.float32) * mean_str
                 + min_str)

    out = general_fourier_online(x, freqs, phases, strengths,
                                 img_size=img_size, f_cut=f_cut, p_cut=p_cut,
                                 eps_scale=eps_scale)
    out = jax.block_until_ready(out)

    ref = _reference(x, freqs, phases, strengths, img_size=img_size,
                     f_cut=f_cut, p_cut=p_cut, eps_scale=eps_scale)
    assert out.shape == (b, c, h, w)
    assert jnp.max(jnp.abs(out - ref)) < 1e-4

    print("KERNEL_OK")
</pallas_src>

<mosaic_0001>
module attributes {stable_mosaic.version = 11 : i64} {
  func.func @_fourier_aug_kernel(%arg0: i32, %arg1: memref<1x32x3xf32, #tpu.memory_space<vmem>>, %arg2: memref<1x8x256xf32, #tpu.memory_space<vmem>>, %arg3: memref<33x256xf32, #tpu.memory_space<vmem>>, %arg4: memref<1x8x256xf32, #tpu.memory_space<vmem>>) attributes {dimension_semantics = [#tpu.dimension_semantics<parallel>], iteration_bounds = array<i64: 1>, scalar_prefetch = 0 : i64, scratch_operands = 0 : i64, tpu.core_type = #tpu.core_type<tc>, window_params = [{transform_indices = @transform_0, window_bounds = array<i64: 1, 32, 3>}, {transform_indices = @transform_1, window_bounds = array<i64: 1, 8, 256>}, {pipeline_mode = #tpu.pipeline_mode<synchronous>, transform_indices = @transform_2, window_bounds = array<i64: 33, 256>}, {transform_indices = @transform_3, window_bounds = array<i64: 1, 8, 256>}]} {
    %c0 = arith.constant 0 : index
    %c0_0 = arith.constant 0 : index
    %c0_1 = arith.constant 0 : index
    %0 = vector.load %arg1[%c0, %c0_0, %c0_1] : memref<1x32x3xf32, #tpu.memory_space<vmem>>, vector<1x32x3xf32>
    %1 = vector.shape_cast %0 : vector<1x32x3xf32> to vector<32x3xf32>
    %2 = vector.extract_strided_slice %1 {offsets = [0, 0], sizes = [32, 1], strides = [1, 1]} : vector<32x3xf32> to vector<32x1xf32>
    %3 = vector.extract_strided_slice %1 {offsets = [0, 1], sizes = [32, 1], strides = [1, 1]} : vector<32x3xf32> to vector<32x1xf32>
    %4 = vector.extract_strided_slice %1 {offsets = [0, 2], sizes = [32, 1], strides = [1, 1]} : vector<32x3xf32> to vector<32x1xf32>
    %c0_2 = arith.constant 0 : index
    %c0_3 = arith.constant 0 : index
    %5 = vector.load %arg3[%c0_2, %c0_3] : memref<33x256xf32, #tpu.memory_space<vmem>>, vector<16x256xf32>
    %c16 = arith.constant 16 : index
    %c0_4 = arith.constant 0 : index
    %6 = vector.load %arg3[%c16, %c0_4] : memref<33x256xf32, #tpu.memory_space<vmem>>, vector<16x256xf32>
    %c32 = arith.constant 32 : index
    %c0_5 = arith.constant 0 : index
    %7 = vector.load %arg3[%c32, %c0_5] : memref<33x256xf32, #tpu.memory_space<vmem>>, vector<1x16xf32>
    %8 = vector.broadcast %2 : vector<32x1xf32> to vector<32x16xf32>
    %9 = vector.broadcast %7 : vector<1x16xf32> to vector<32x16xf32>
    %10 = arith.mulf %8, %9 : vector<32x16xf32>
    %11 = vector.broadcast %3 : vector<32x1xf32> to vector<32x16xf32>
    %12 = vector.broadcast %7 : vector<1x16xf32> to vector<32x16xf32>
    %13 = arith.mulf %11, %12 : vector<32x16xf32>
    %cst = arith.constant 0.785398185 : f32
    %14 = vector.broadcast %cst : f32 to vector<32x16xf32>
    %15 = arith.subf %13, %14 : vector<32x16xf32>
    %16 = math.sin %10 : vector<32x16xf32>
    %17 = math.cos %10 : vector<32x16xf32>
    %18 = math.sin %15 : vector<32x16xf32>
    %19 = math.cos %15 : vector<32x16xf32>
    %20 = arith.mulf %16, %16 : vector<32x16xf32>
    %cst_6 = arith.constant dense<0.000000e+00> : vector<32xf32>
    %21 = vector.multi_reduction <add>, %20, %cst_6 [1] : vector<32x16xf32> to vector<32xf32>
    %22 = vector.shape_cast %21 : vector<32xf32> to vector<32x1xf32>
    %23 = arith.mulf %17, %17 : vector<32x16xf32>
    %cst_7 = arith.constant dense<0.000000e+00> : vector<32xf32>
    %24 = vector.multi_reduction <add>, %23, %cst_7 [1] : vector<32x16xf32> to vector<32xf32>
    %25 = vector.shape_cast %24 : vector<32xf32> to vector<32x1xf32>
    %26 = arith.mulf %16, %17 : vector<32x16xf32>
    %cst_8 = arith.constant dense<0.000000e+00> : vector<32xf32>
    %27 = vector.multi_reduction <add>, %26, %cst_8 [1] : vector<32x16xf32> to vector<32xf32>
    %28 = vector.shape_cast %27 : vector<32xf32> to vector<32x1xf32>
    %29 = arith.mulf %19, %19 : vector<32x16xf32>
    %cst_9 = arith.constant dense<0.000000e+00> : vector<32xf32>
    %30 = vector.multi_reduction <add>, %29, %cst_9 [1] : vector<32x16xf32> to vector<32xf32>
    %31 = vector.shape_cast %30 : vector<32xf32> to vector<32x1xf32>
    %32 = arith.mulf %18, %18 : vector<32x16xf32>
    %cst_10 = arith.constant dense<0.000000e+00> : vector<32xf32>
    %33 = vector.multi_reduction <add>, %32, %cst_10 [1] : vector<32x16xf32> to vector<32xf32>
    %34 = vector.shape_cast %33 : vector<32xf32> to vector<32x1xf32>
    %35 = arith.mulf %19, %18 : vector<32x16xf32>
    %cst_11 = arith.constant dense<0.000000e+00> : vector<32xf32>
    %36 = vector.multi_reduction <add>, %35, %cst_11 [1] : vector<32x16xf32> to vector<32xf32>
    %37 = vector.shape_cast %36 : vector<32xf32> to vector<32x1xf32>
    %38 = arith.mulf %22, %31 : vector<32x1xf32>
    %cst_12 = arith.constant 2.000000e+00 : f32
    %39 = vector.broadcast %cst_12 : f32 to vector<32x1xf32>
    %40 = arith.mulf %39, %28 : vector<32x1xf32>
    %41 = arith.mulf %40, %37 : vector<32x1xf32>
    %42 = arith.addf %38, %41 : vector<32x1xf32>
    %43 = arith.mulf %25, %34 : vector<32x1xf32>
    %44 = arith.addf %42, %43 : vector<32x1xf32>
    %45 = math.rsqrt %44 : vector<32x1xf32>
    %46 = arith.mulf %4, %45 : vector<32x1xf32>
    %47 = vector.broadcast %46 : vector<32x1xf32> to vector<32x16xf32>
    %48 = arith.mulf %47, %16 : vector<32x16xf32>
    %49 = vector.broadcast %46 : vector<32x1xf32> to vector<32x16xf32>
    %50 = arith.mulf %49, %17 : vector<32x16xf32>
    %51 = tpu.concatenate %48, %50 in 0 : vector<32x16xf32>, vector<32x16xf32> -> vector<64x16xf32>
    %52 = tpu.concatenate %19, %18 in 0 : vector<32x16xf32>, vector<32x16xf32> -> vector<64x16xf32>
    %cst_13 = arith.constant dense<0.000000e+00> : vector<64x256xf32>
    %53 = tpu.matmul %51, %5, %cst_13 {dimension_numbers = #tpu.dot_dimension_numbers<[1], [0], [0], [1], [0, 0, 1, 1], [], []>} : vector<64x16xf32>, vector<16x256xf32>, vector<64x256xf32> -> vector<64x256xf32>
    %cst_14 = arith.constant dense<0.000000e+00> : vector<64x256xf32>
    %54 = tpu.matmul %52, %6, %cst_14 {dimension_numbers = #tpu.dot_dimension_numbers<[1], [0], [0], [1], [0, 0, 1, 1], [], []>} : vector<64x16xf32>, vector<16x256xf32>, vector<64x256xf32> -> vector<64x256xf32>
    %55 = arith.mulf %53, %54 : vector<64x256xf32>
    %56 = vector.extract_strided_slice %55 {offsets = [0, 0], sizes = [32, 256], strides = [1, 1]} : vector<64x256xf32> to vector<32x256xf32>
    %57 = vector.extract_strided_slice %55 {offsets = [32, 0], sizes = [32, 256], strides = [1, 1]} : vector<64x256xf32> to vector<32x256xf32>
    %58 = arith.addf %56, %57 : vector<32x256xf32>
    %59 = vector.shape_cast %58 : vector<32x256xf32> to vector<8x4x256xf32>
    %cst_15 = arith.constant dense<0.000000e+00> : vector<8x256xf32>
    %60 = vector.multi_reduction <add>, %59, %cst_15 [1] : vector<8x4x256xf32> to vector<8x256xf32>
    %c0_16 = arith.constant 0 : index
    %c0_17 = arith.constant 0 : index
    %c0_18 = arith.constant 0 : index
    %61 = vector.load %arg2[%c0_16, %c0_17, %c0_18] : memref<1x8x256xf32, #tpu.memory_space<vmem>>, vector<1x8x256xf32>
    %62 = vector.shape_cast %61 : vector<1x8x256xf32> to vector<8x256xf32>
    %63 = arith.addf %62, %60 : vector<8x256xf32>
    %cst_19 = arith.constant 0.000000e+00 : f32
    %cst_20 = arith.constant 1.000000e+00 : f32
    %64 = vector.broadcast %cst_19 : f32 to vector<8x256xf32>
    %65 = arith.maximumf %64, %63 : vector<8x256xf32>
    %66 = vector.broadcast %cst_20 : f32 to vector<8x256xf32>
    %67 = arith.minimumf %66, %65 : vector<8x256xf32>
    %c0_21 = arith.constant 0 : index
    %c0_22 = arith.constant 0 : index
    %c0_23 = arith.constant 0 : index
    %68 = vector.load %arg4[%c0_21, %c0_22, %c0_23] : memref<1x8x256xf32, #tpu.memory_space<vmem>>, vector<1x8x256xf32>
    %69 = vector.shape_cast %68 : vector<1x8x256xf32> to vector<8x256xf32>
    %70 = vector.shape_cast %67 : vector<8x256xf32> to vector<1x8x256xf32>
    tpu.vector_store %arg4[%c0_21, %c0_22, %c0_23], %70 {strides = array<i32>} : memref<1x8x256xf32, #tpu.memory_space<vmem>>, vector<1x8x256xf32>,
    return
  }
  func.func @transform_0(%arg0: i32) -> (i32, i32, i32) {
    %c0_i32 = arith.constant 0 : i32
    %c0_i32_0 = arith.constant 0 : i32
    %c0_i32_1 = arith.constant 0 : i32
    return %arg0, %c0_i32, %c0_i32_0 : i32, i32, i32
  }
  func.func @transform_1(%arg0: i32) -> (i32, i32, i32) {
    %c0_i32 = arith.constant 0 : i32
    %c0_i32_0 = arith.constant 0 : i32
    %c0_i32_1 = arith.constant 0 : i32
    return %arg0, %c0_i32, %c0_i32_0 : i32, i32, i32
  }
  func.func @transform_2(%arg0: i32) -> (i32, i32) {
    %c0_i32 = arith.constant 0 : i32
    %c0_i32_0 = arith.constant 0 : i32
    %c0_i32_1 = arith.constant 0 : i32
    return %c0_i32, %c0_i32_0 : i32, i32
  }
  func.func @transform_3(%arg0: i32) -> (i32, i32, i32) {
    %c0_i32 = arith.constant 0 : i32
    %c0_i32_0 = arith.constant 0 : i32
    %c0_i32_1 = arith.constant 0 : i32
    return %arg0, %c0_i32, %c0_i32_0 : i32, i32, i32
  }
}

</mosaic_0001>

<bundles_post_ra>
// kernel: tpu_custom_call.1
= control target key start
LH: loop header
LB: loop body
LE: loop exit
PB: predicated region body
PF: predicated region fallthrough
CT: control target
= control target key end

     0   :  { %8 = vsyncpa [#allocation3], 0  ;;  %s3773_s0 = inlined_call_operand.vmem [shape: f32[1,32,3], index: 0, kind: input, shape index: {}]   ;;  %s3774_s1 = inlined_call_operand.vmem [shape: f32[1,8,256], index: 1, kind: input, shape index: {}]   ;;  %s3775_s2 = inlined_call_operand.hbm [shape: f32[33,256], index: 2, kind: input, shape index: {}]   ;;  %s3776_s3 = inlined_call_operand.hbm [shape: f32[1,8,256], index: 3, kind: output, shape index: {}]  }
   0x1   :  { %9 = vsyncpa [#allocation4], 0  ;;  %s2663_s12 = smov [#allocation2]   ;;  %s2615_s16 = scalar_lea.hbm %s3775_s2, 1280 }
   0x2   :  { %s19_s13 = sshll.u32 %s2663_s12, 4  ;;  %p2616_p0 = scmp.ne.s32.totalorder %s3775_s2, %s2615_s16  ;;  %s20_s13 = int_to_ptr.vmem [resolvable:$true] %s19_s13 }
   0x3   :  { %p2619_p1 = scmp.lt.u32.totalorder %s2615_s16, %s3775_s2 }
   0x5   :  { %p2621_p2 = pnand %p2619_p1, %p2616_p0 }
   0x7   :  { %2624 = shalt.err (!%p2621_p2)
}
   0x8   :  { %s2625_s21 = scalar_lea.vmem %s20_s13, 1280  ;;  %p2630_p4 = scmp.lt.s32.totalorder %s20_s13, %s20_s13 }
   0x9   :  { %p2626_p3 = scmp.ne.s32.totalorder %s20_s13, %s2625_s21  ;;  %p2631_p5 = scmp.lt.s32.totalorder %s2625_s21, %s2625_s21 }
   0xb   :  { %p2632_p6 = por %p2631_p5, %p2630_p4 }
   0xd   :  { %p2633_p7 = pnand %p2632_p6, %p2626_p3 }
   0xf   :  { %2636 = shalt.err (!%p2633_p7)
}
  0x10   :  { %s2664_s22 = smov 256   ;;  %s2665_s23 = smov 16  }
  0x11   :  { %25 = dma.hbm_to_vmem [thread:$0]  %s3775_s2, 1280, %s20_s13, [#allocation3], %s2664_s22, %s2664_s22, %s2665_s23  }
  0x12   :  { %2659 = dma.done.wait [#allocation3], 1280  }
  0x13   :  { %2660 = vsyncadd [#allocation3], 4294966016  ;;  %v2666_v0 = vmov 0   ;;  %v30_v1 = vld [vmem:[%s3773_s0 + $0x8] sm:$0xff]  ;;  %v29_v2 = vld [vmem:[%s3773_s0] sm:$0xff]  ;;  %v2667_v3 = vmov 1  }
  0x14   :  { %2566 = vset.pattern.permute.xlu1 %v2666_v0  ;;  %2564 = vset.pattern.permute.xlu0 %v2666_v0  ;;  %v31_v4 = vld [vmem:[%s3773_s0 + $0x10] sm:$0xff]  ;;  %v32_v5 = vld [vmem:[%s3773_s0 + $0x18] sm:$0xff]  ;;  %v2668_v42 = vmov 683565275   ;;  %v2669_v44 = vmov 2475754826  }
  0x15   :  { %49 = vperm.xlu1 %2566, %v30_v1   ;;  %44 = vperm.xlu0 %2564, %v29_v2   ;;  %v2721_v6 = vld [vmem:[#allocation2 + $0x40] ss:$0 sm:$0xff]  ;;  %v2670_v46 = vmov 2131351028   ;;  %v2671_v48 = vmov 2102212464  }
  0x16   :  { %v3782_v50 = vmov 920167782   ;;  %v2673_v59 = vmov 1326507024   ;;  %s2676_s17 = smov [#allocation5]  }
  0x17   :  { %s2409_s18 = sshll.u32 %s2676_s17, 4  ;;  %s2410_s18 = int_to_ptr.vmem [resolvable:$true] %s2409_s18 }
  0x18   :  { %p2642_p9 = scmp.lt.s32.totalorder %s2410_s18, %s2410_s18 }
  0x19   :  { %2567 = vset.pattern.permute.xlu1 %v2667_v3  ;;  %2565 = vset.pattern.permute.xlu0 %v2667_v3 }
  0x1a   :  { %71 = vperm.xlu1 %2567, %v30_v1   ;;  %67 = vperm.xlu0 %2565, %v29_v2  }
  0x1e   :  { %2568 = vset.pattern.permute.xlu1 %v2666_v0  ;;  %75 = vperm.xlu0 %2565, %v31_v4  }
  0x1f   :  { %54 = vperm.xlu1 %2568, %v31_v4  }
  0x22   :  { %79 = vperm.xlu0 %2565, %v32_v5  }
  0x23   :  { %59 = vperm.xlu1 %2568, %v32_v5  }
  0x94   :  { %v50_v7 = vpop.permute.xlu1 %49  ;;  %v45_v8 = vpop.permute.xlu0 %44 }
  0x95   :  { %v2724_v9 = vmul.f32 %v50_v7, %v2721_v6  ;;  %v2727_v10 = vmul.f32 %v45_v8, %v2721_v6 }
  0x97   :  { %v194_v11 = vand.u32 2147483647, %v2724_v9  ;;  %v197_v12 = vand.u32 2139095040, %v2724_v9  ;;  %v90_v13 = vand.u32 2147483647, %v2727_v10  ;;  %v93_v14 = vand.u32 2139095040, %v2727_v10 }
  0x99   :  { %v198_v15 = vshrl.u32 %v197_v12, 23  ;;  %v201_v16 = vand.u32 8388607, %v194_v11  ;;  %v72_v17 = vpop.permute.xlu1 %71  ;;  %v68_v18 = vpop.permute.xlu0 %67  ;;  %v94_v19 = vshrl.u32 %v93_v14, 23  ;;  %v97_v20 = vand.u32 8388607, %v90_v13 }
  0x9a   :  { %v83_v21 = vmul.f32 %v72_v17, %v2721_v6  ;;  %v82_v23 = vmul.f32 %v68_v18, %v2721_v6 }
  0x9b   :  { %v2426_v22 = vadd.s32 4294967169, %v198_v15  ;;  %v2422_v24 = vadd.s32 4294967169, %v94_v19  ;;  %v202_v26 = vor.u32 8388608, %v201_v16  ;;  %v98_v28 = vor.u32 8388608, %v97_v20 }
  0x9c   :  { %v2739_v25 = vadd.f32 -0.7853982, %v83_v21  ;;  %v2741_v30 = vadd.f32 -0.7853982, %v82_v23 }
  0x9d   :  { %v204_v27 = vadd.s32 1, %v2426_v22  ;;  %v100_v29 = vadd.s32 1, %v2422_v24  ;;  %v2744_v34 = vshll.u32 %v202_v26, 8  ;;  %v2746_v36 = vshll.u32 %v98_v28, 8 }
  0x9e   :  { %v1025_v32 = vand.u32 2139095040, %v2739_v25  ;;  %v3780_v39 = vand.u32 2147483647, %v2739_v25  ;;  %v921_v40 = vand.u32 2139095040, %v2741_v30 }
  0x9f   :  { %vm205_vm0 = vcmp.gt.s32.totalorder %v204_v27, 0  ;;  %vm101_vm1 = vcmp.gt.s32.totalorder %v100_v29, 0 }
  0xa0   :  { %v206_v31 = vsel %vm205_vm0, %v204_v27, 0  ;;  %v102_v35 = vsel %vm101_vm1, %v100_v29, 0  ;;  %v2759_v53 = vshrl.u32 %v1025_v32, 23 }
  0xa1   :  { %v208_v33 = vand.u32 31, %v206_v31  ;;  %v207_v37 = vshrl.u32 %v206_v31, 5  ;;  %v2748_v38 = vand.u32 31, %v102_v35  ;;  %v2757_v52 = vshrl.u32 %v102_v35, 5 }
  0xa3   :  { %v209_v41 = vsub.s32 32, %v208_v33  ;;  %v211_v43 = vshll.u32 %v2668_v42, %v208_v33  ;;  %v214_v45 = vshll.u32 %v2669_v44, %v208_v33  ;;  %v217_v47 = vshll.u32 %v2670_v46, %v208_v33 }
  0xa4   :  { %v220_v49 = vshll.u32 %v2671_v48, %v208_v33  ;;  %v223_v51 = vshll.u32 %v3782_v50, %v208_v33  ;;  %vm226_vm2 = vcmp.lt.s32.totalorder %v207_v37, 1  ;;  %vm227_vm3 = vcmp.lt.s32.totalorder %v207_v37, 2 }
  0xa5   :  { %v210_v54 = vshrl.u32 %v2668_v42, %v209_v41  ;;  %v212_v55 = vshrl.u32 %v2669_v44, %v209_v41  ;;  %v215_v56 = vshrl.u32 %v2670_v46, %v209_v41  ;;  %v218_v57 = vshrl.u32 %v2671_v48, %v209_v41 }
  0xa6   :  { %v221_v58 = vshrl.u32 %v3782_v50, %v209_v41  ;;  %v224_v60 = vshrl.u32 %v2673_v59, %v209_v41  ;;  %v105_v0 = vsub.s32 32, %v2748_v38  ;;  %vm228_vm4 = vcmp.lt.s32.totalorder %v207_v37, 3 }
  0xa7   :  { %v213_v61 = vor.u32 %v212_v55, %v211_v43  ;;  %v216_v62 = vor.u32 %v215_v56, %v214_v45  ;;  %v219_v63 = vor.u32 %v218_v57, %v217_v47  ;;  %vm229_vm5 = vcmp.lt.s32.totalorder %v207_v37, 4 }
  0xa8   :  { %v222_v1 = vor.u32 %v221_v58, %v220_v49  ;;  %v225_v2 = vor.u32 %v224_v60, %v223_v51  ;;  %v107_v15 = vshll.u32 %v2668_v42, %v2748_v38  ;;  %v108_v18 = vshrl.u32 %v2669_v44, %v105_v0 }
  0xa9   :  { %v230_v3 = vsel %vm226_vm2, %v210_v54, %v213_v61  ;;  %v231_v4 = vsel %vm229_vm5, %v219_v63, 2102212464  ;;  %v234_v5 = vsel %vm226_vm2, %v213_v61, %v216_v62  ;;  %v238_v7 = vsel %vm226_vm2, %v216_v62, %v219_v63 }
  0xaa   :  { %v232_v8 = vsel %vm228_vm4, %v216_v62, %v231_v4  ;;  %v235_v12 = vsel %vm229_vm5, %v222_v1, 920167782  ;;  %v239_v14 = vsel %vm229_vm5, %v225_v2, 1326507024  ;;  %v110_v19 = vshll.u32 %v2669_v44, %v2748_v38 }
  0xab   :  { %v236_v16 = vsel %vm228_vm4, %v219_v63, %v235_v12  ;;  %v240_v17 = vsel %vm228_vm4, %v222_v1, %v239_v14  ;;  %v233_v20 = vsel %vm227_vm3, %v230_v3, %v232_v8  ;;  %v111_v23 = vshrl.u32 %v2670_v46, %v105_v0 }
  0xac   :  { %v237_v21 = vsel %vm227_vm3, %v234_v5, %v236_v16  ;;  %v241_v22 = vsel %vm227_vm3, %v238_v7, %v240_v17  ;;  %v109_v29 = vor.u32 %v108_v18, %v107_v15  ;;  %v113_v32 = vshll.u32 %v2670_v46, %v2748_v38 }
  0xad   :  { %v2778_v24 = vmul.u32.u64.low %v2744_v34, %v241_v22  ;;  %v2779_v26 = vmul.u32.u64.high %v2744_v34, %v241_v22, %v2778_v24  ;;  %v2782_v27 = vmul.u32.u64.low %v2744_v34, %v237_v21  ;;  %v2783_v28 = vmul.u32.u64.high %v2744_v34, %v237_v21, %v2782_v27 }
  0xae   :  { %v112_v31 = vor.u32 %v111_v23, %v110_v19  ;;  %v114_v33 = vshrl.u32 %v2671_v48, %v105_v0  ;;  %v106_v35 = vshrl.u32 %v2668_v42, %v105_v0  ;;  %v116_v37 = vshll.u32 %v2671_v48, %v2748_v38 }
  0xaf   :  { %v117_v41 = vshrl.u32 %v3782_v50, %v105_v0  ;;  %v120_v43 = vshrl.u32 %v2673_v59, %v105_v0  ;;  %v249_v45 = vmul.u32 %v2744_v34, %v233_v20  ;;  %v119_v49 = vshll.u32 %v3782_v50, %v2748_v38 }
  0xb0   :  { %v115_v47 = vor.u32 %v114_v33, %v113_v32  ;;  %vm122_vm6 = vcmp.lt.s32.totalorder %v2757_v52, 1  ;;  %vm251_vm7 = vc.u32 %v2779_v26, %v2782_v27  ;;  %v252_v51 = vadd.s32 1, %v2783_v28 }
  0xb1   :  { %v118_v54 = vor.u32 %v117_v41, %v116_v37  ;;  %vm123_vm8 = vcmp.lt.s32.totalorder %v2757_v52, 2  ;;  %v121_v55 = vor.u32 %v120_v43, %v119_v49  ;;  %vm124_vm9 = vcmp.lt.s32.totalorder %v2757_v52, 3 }
  0xb2   :  { %vm125_vm10 = vcmp.lt.s32.totalorder %v2757_v52, 4  ;;  %v130_v56 = vsel %vm122_vm6, %v109_v29, %v112_v31  ;;  %v253_v34 = vsel %vm251_vm7, %v252_v51, %v2783_v28  ;;  %v134_v38 = vsel %vm122_vm6, %v112_v31, %v115_v47 }
  0xb3   :  { %v127_v57 = vsel %vm125_vm10, %v115_v47, 2102212464  ;;  %v131_v58 = vsel %vm125_vm10, %v118_v54, 920167782  ;;  %v254_v60 = vadd.s32 %v253_v34, %v249_v45  ;;  %v126_v61 = vsel %vm122_vm6, %v106_v35, %v109_v29 }
  0xb4   :  { %v132_v62 = vsel %vm124_vm9, %v115_v47, %v131_v58  ;;  %v135_v63 = vsel %vm125_vm10, %v121_v55, 1326507024  ;;  %v128_v0 = vsel %vm124_vm9, %v112_v31, %v127_v57  ;;  %v2458_v3 = vadd.s32 4294967169, %v2759_v53 }
  0xb5   :  { %v133_v1 = vsel %vm123_vm8, %v130_v56, %v132_v62  ;;  %v136_v2 = vsel %vm124_vm9, %v118_v54, %v135_v63  ;;  %v255_v4 = vadd.s32 536870912, %v254_v60  ;;  %v1029_v15 = vand.u32 8388607, %v3780_v39 }
  0xb6   :  { %v137_v5 = vsel %vm123_vm8, %v134_v38, %v136_v2  ;;  %v2809_v7 = vmul.u32.u64.low %v2746_v36, %v133_v1  ;;  %v2810_v8 = vmul.u32.u64.high %v2746_v36, %v133_v1, %v2809_v7  ;;  %v1032_v16 = vadd.s32 1, %v2458_v3 }
  0xb7   :  { %v2814_v12 = vmul.u32.u64.low %v2746_v36, %v137_v5  ;;  %v2815_v14 = vmul.u32.u64.high %v2746_v36, %v137_v5, %v2814_v12  ;;  %v2819_v17 = vshrl.u32 %v255_v4, 30  ;;  %v129_v53 = vsel %vm123_vm8, %v126_v61, %v128_v0 }
  0xb8   :  { %v922_v18 = vshrl.u32 %v921_v40, 23  ;;  %vm1033_vm11 = vcmp.gt.s32.totalorder %v1032_v16, 0  ;;  %v148_v20 = vadd.s32 1, %v2810_v8  ;;  %v3781_v22 = vand.u32 2147483647, %v2741_v30 }
  0xb9   :  { %v257_v19 = vshll.u32 %v2819_v17, 30  ;;  %v1034_v21 = vsel %vm1033_vm11, %v1032_v16, 0  ;;  %v145_v23 = vmul.u32 %v2746_v36, %v129_v53  ;;  %vm147_vm12 = vc.u32 %v2815_v14, %v2809_v7 }
  0xba   :  { %v1030_v24 = vor.u32 8388608, %v1029_v15  ;;  %v1036_v28 = vand.u32 31, %v1034_v21  ;;  %v250_v52 = vadd.s32 %v2782_v27, %v2779_v26  ;;  %v149_v40 = vsel %vm147_vm12, %v148_v20, %v2810_v8 }
  0xbb   :  { %v2832_v29 = vsub.s32 %v254_v60, %v257_v19  ;;  %v2454_v31 = vadd.s32 4294967169, %v922_v18  ;;  %v150_v32 = vadd.s32 %v149_v40, %v145_v23  ;;  %v1035_v27 = vshrl.u32 %v1034_v21, 5  ;;  %v76_v18 = vpop.permute.xlu0 %75 }
  0xbc   :  { %v1037_v33 = vsub.s32 32, %v1036_v28  ;;  %v1039_v35 = vshll.u32 %v2668_v42, %v1036_v28  ;;  %v1042_v37 = vshll.u32 %v2669_v44, %v1036_v28  ;;  %v1045_v41 = vshll.u32 %v2670_v46, %v1036_v28 }
  0xbd   :  { %v260_v36 = vsub.s32 0, %v2832_v29  ;;  %v1048_v43 = vshll.u32 %v2671_v48, %v1036_v28  ;;  %v1051_v45 = vshll.u32 %v3782_v50, %v1036_v28  ;;  %v151_v26 = vadd.s32 536870912, %v150_v32 }
  0xbe   :  { %v1040_v47 = vshrl.u32 %v2669_v44, %v1037_v33  ;;  %v1043_v49 = vshrl.u32 %v2670_v46, %v1037_v33  ;;  %v1046_v54 = vshrl.u32 %v2671_v48, %v1037_v33  ;;  %v1049_v55 = vshrl.u32 %v3782_v50, %v1037_v33 }
  0xbf   :  { %v2427_v51 = vmin.u32 %v260_v36, %v2832_v29  ;;  %v1052_v56 = vshrl.u32 %v2673_v59, %v1037_v33  ;;  %v2847_v34 = vshrl.u32 %v151_v26, 30  ;;  %v2849_v38 = vshll.u32 %v1030_v24, 8  ;;  %v55_v26 = vpop.permute.xlu1 %54 }
  0xc0   :  { %v1041_v57 = vor.u32 %v1040_v47, %v1039_v35  ;;  %v1044_v58 = vor.u32 %v1043_v49, %v1042_v37  ;;  %v1047_v61 = vor.u32 %v1046_v54, %v1045_v41  ;;  %v1050_v62 = vor.u32 %v1049_v55, %v1048_v43 }
  0xc1   :  { %v262_v60 = vclz %v2427_v51  ;;  %v1053_v63 = vor.u32 %v1052_v56, %v1051_v45  ;;  %v153_v0 = vshll.u32 %v2847_v34, 30  ;;  %v1038_v1 = vshrl.u32 %v2668_v42, %v1037_v33 }
  0xc2   :  { %vm1054_vm13 = vcmp.lt.s32.totalorder %v1035_v27, 1  ;;  %v928_v2 = vadd.s32 1, %v2454_v31  ;;  %vm1055_vm14 = vcmp.lt.s32.totalorder %v1035_v27, 2  ;;  %vm1057_vm15 = vcmp.lt.s32.totalorder %v1035_v27, 4 }
  0xc3   :  { %v2428_v3 = vadd.s32 4294967294, %v262_v60  ;;  %v1062_v4 = vsel %vm1054_vm13, %v1041_v57, %v1044_v58  ;;  %v2854_v5 = vsub.s32 %v150_v32, %v153_v0  ;;  %vm1056_vm0 = vcmp.lt.s32.totalorder %v1035_v27, 3 }
  0xc4   :  { %v1063_v8 = vsel %vm1057_vm15, %v1050_v62, 920167782  ;;  %v1066_v12 = vsel %vm1054_vm13, %v1044_v58, %v1047_v61  ;;  %v1059_v15 = vsel %vm1057_vm15, %v1047_v61, 2102212464  ;;  %v1067_v53 = vsel %vm1057_vm15, %v1053_v63, 1326507024 }
  0xc5   :  { %vm2429_vm1 = vcmp.lt.s32.totalorder %v2428_v3, 0  ;;  %v1064_v16 = vsel %vm1056_vm0, %v1047_v61, %v1063_v8  ;;  %v156_v20 = vsub.s32 0, %v2854_v5  ;;  %v1068_v23 = vsel %vm1056_vm0, %v1050_v62, %v1067_v53 }
  0xc6   :  { %v265_v19 = vsel %vm2429_vm1, 0, %v2428_v3  ;;  %v1065_v21 = vsel %vm1055_vm14, %v1062_v4, %v1064_v16  ;;  %v1058_v40 = vsel %vm1054_vm13, %v1038_v1, %v1041_v57  ;;  %v1069_v31 = vsel %vm1055_vm14, %v1066_v12, %v1068_v23 }
  0xc7   :  { %v266_v24 = vsub.s32 32, %v265_v19  ;;  %v270_v28 = vsub.s32 4294967266, %v265_v19  ;;  %v2423_v32 = vmin.u32 %v156_v20, %v2854_v5  ;;  %v1060_v33 = vsel %vm1056_vm0, %v1044_v58, %v1059_v15 }
  0xc8   :  { %v2866_v35 = vmul.u32.u64.low %v2849_v38, %v1069_v31  ;;  %v2867_v37 = vmul.u32.u64.high %v2849_v38, %v1069_v31, %v2866_v35  ;;  %v2870_v43 = vmul.u32.u64.low %v2849_v38, %v1065_v21  ;;  %v2871_v45 = vmul.u32.u64.high %v2849_v38, %v1065_v21, %v2870_v43 }
  0xc9   :  { %v268_v36 = vshrl.u32 %v250_v52, %v266_v24  ;;  %v271_v41 = vadd.s32 127, %v270_v28  ;;  %v158_v47 = vclz %v2423_v32  ;;  %v2876_v49 = vand.u32 8388607, %v3781_v22  ;;  %v80_v52 = vpop.permute.xlu0 %79 }
  0xca   :  { %vm929_vm2 = vcmp.gt.s32.totalorder %v928_v2, 0  ;;  %v267_v51 = vshll.u32 %v2832_v29, %v265_v19  ;;  %v1061_v55 = vsel %vm1055_vm14, %v1058_v40, %v1060_v33  ;;  %vm1079_vm3 = vc.u32 %v2867_v37, %v2870_v43 }
  0xcb   :  { %v272_v54 = vshll.u32 %v271_v41, 23  ;;  %v930_v56 = vsel %vm929_vm2, %v928_v2, 0  ;;  %v2424_v57 = vadd.s32 4294967294, %v158_v47  ;;  %v84_v58 = vmul.f32 %v76_v18, %v2721_v6 }
  0xcc   :  { %v2884_v60 = vmul.f32 %v55_v26, %v2721_v6  ;;  %v269_v61 = vor.u32 %v268_v36, %v267_v51  ;;  %v1080_v63 = vadd.s32 1, %v2871_v45  ;;  %v932_v0 = vand.u32 31, %v930_v56 }
  0xcd   :  { %v273_v62 = vor.u32 4788187, %v272_v54  ;;  %v146_v29 = vadd.s32 %v2809_v7, %v2815_v14  ;;  %vm2425_vm4 = vcmp.lt.s32.totalorder %v2424_v57, 0  ;;  %v1077_v27 = vmul.u32 %v2849_v38, %v1061_v55 }
  0xce   :  { %v2891_v1 = vmul.f32 %v80_v52, %v2721_v6  ;;  %v161_v3 = vsel %vm2425_vm4, 0, %v2424_v57  ;;  %v1081_v4 = vsel %vm1079_vm3, %v1080_v63, %v2871_v45  ;;  %v933_v8 = vsub.s32 32, %v932_v0 }
  0xcf   :  { %v274_v2 = vand.u32 2147483647, %v273_v62  ;;  %v162_v12 = vsub.s32 32, %v161_v3  ;;  %v166_v15 = vsub.s32 4294967266, %v161_v3  ;;  %v1082_v16 = vadd.s32 %v1081_v4, %v1077_v27 }
  0xd0   :  { %v2894_v53 = vshrl.u32 %v930_v56, 5  ;;  %v276_v18 = vcvt.s32.f32 %v269_v61  ;;  %v163_v19 = vshll.u32 %v2854_v5, %v161_v3  ;;  %v935_v7 = vshll.u32 %v2668_v42, %v932_v0 }
  0xd1   :  { %v936_v14 = vshrl.u32 %v2669_v44, %v933_v8  ;;  %vm196_vm5 = vcmp.lt.s32.totalorder %v2724_v9, 0  ;;  %v164_v38 = vshrl.u32 %v146_v29, %v162_v12  ;;  %v167_v20 = vadd.s32 127, %v166_v15 }
  0xd2   :  { %v1083_v21 = vadd.s32 536870912, %v1082_v16  ;;  %v938_v23 = vshll.u32 %v2669_v44, %v932_v0  ;;  %v277_v24 = vmul.f32 %v276_v18, %v274_v2  ;;  %v926_v28 = vor.u32 8388608, %v2876_v49 }
  0xd3   :  { %v939_v40 = vshrl.u32 %v2670_v46, %v933_v8  ;;  %v941_v31 = vshll.u32 %v2670_v46, %v932_v0  ;;  %v165_v32 = vor.u32 %v164_v38, %v163_v19  ;;  %v168_v5 = vshll.u32 %v167_v20, 23 }
  0xd4   :  { %v2904_v33 = vshrl.u32 %v1083_v21, 30  ;;  %v942_v35 = vshrl.u32 %v2671_v48, %v933_v8  ;;  %vm2909_vm6 = vcmp.le.f32.partialorder %v194_v11, 0.7853982  ;;  %v944_v41 = vshll.u32 %v2671_v48, %v932_v0 }
  0xd5   :  { %v945_v45 = vshrl.u32 %v3782_v50, %v933_v8  ;;  %vm950_vm7 = vcmp.lt.s32.totalorder %v2894_v53, 1  ;;  %v2916_v26 = vadd.f32 -0.7853982, %v84_v58  ;;  %v169_v47 = vor.u32 4788187, %v168_v5 }
  0xd6   :  { %v1085_v49 = vshll.u32 %v2904_v33, 30  ;;  %v937_v51 = vor.u32 %v936_v14, %v935_v7  ;;  %v940_v54 = vor.u32 %v939_v40, %v938_v23  ;;  %v278_v55 = vxor.u32 2147483648, %v277_v24 }
  0xd7   :  { %v943_v56 = vor.u32 %v942_v35, %v941_v31  ;;  %v946_v52 = vor.u32 %v945_v45, %v944_v41  ;;  %v947_v11 = vshll.u32 %v3782_v50, %v932_v0  ;;  %vm92_vm8 = vcmp.lt.s32.totalorder %v2727_v10, 0 }
  0xd8   :  { %v170_v57 = vand.u32 2147483647, %v169_v47  ;;  %v172_v61 = vcvt.s32.f32 %v165_v32  ;;  %v2921_v62 = vsub.s32 %v1082_v16, %v1085_v49  ;;  %v948_v63 = vshrl.u32 %v2673_v59, %v933_v8 }
  0xd9   :  { %v934_v58 = vshrl.u32 %v2668_v42, %v933_v8  ;;  %vm951_vm9 = vcmp.lt.s32.totalorder %v2894_v53, 2  ;;  %vm952_vm10 = vcmp.lt.s32.totalorder %v2894_v53, 3  ;;  %vm953_vm11 = vcmp.lt.s32.totalorder %v2894_v53, 4 }
  0xda   :  { %v173_v29 = vmul.f32 %v172_v61, %v170_v57  ;;  %v1088_v27 = vsub.s32 0, %v2921_v62  ;;  %v949_v0 = vor.u32 %v948_v63, %v947_v11  ;;  %v958_v2 = vsel %vm950_vm7, %v937_v51, %v940_v54 }
  0xdb   :  { %v279_v3 = vsel %vm196_vm5, %v278_v55, %v277_v24  ;;  %vm2935_vm12 = vcmp.le.f32.partialorder %v90_v13, 0.7853982  ;;  %v959_v8 = vsel %vm953_vm11, %v946_v52, 920167782  ;;  %v962_v12 = vsel %vm950_vm7, %v940_v54, %v943_v56 }
  0xdc   :  { %v966_v15 = vshll.u32 %v926_v28, 8  ;;  %v2459_v16 = vmin.u32 %v1088_v27, %v2921_v62  ;;  %v955_v18 = vsel %vm953_vm11, %v943_v56, 2102212464  ;;  %v960_v19 = vsel %vm952_vm10, %v943_v56, %v959_v8 }
  0xdd   :  { %v3779_v13 = vand.u32 2147483647, %v2916_v26  ;;  %v174_v7 = vxor.u32 2147483648, %v173_v29  ;;  %v961_v14 = vsel %vm951_vm9, %v958_v2, %v960_v19  ;;  %v963_v38 = vsel %vm953_vm11, %v949_v0, 1326507024 }
  0xde   :  { %v1129_v20 = vand.u32 2139095040, %v2916_v26  ;;  %v282_v21 = vsel %vm2909_vm6, %v2724_v9, %v279_v3  ;;  %v1090_v23 = vclz %v2459_v16  ;;  %v954_v24 = vsel %vm950_vm7, %v934_v58, %v937_v51 }
  0xdf   :  { %v964_v28 = vsel %vm952_vm10, %v946_v52, %v963_v38  ;;  %v956_v40 = vsel %vm952_vm10, %v940_v54, %v955_v18  ;;  %v2965_v32 = vmul.u32.u64.low %v966_v15, %v961_v14  ;;  %v2966_v5 = vmul.u32.u64.high %v966_v15, %v961_v14, %v2965_v32 }
  0xe0   :  { %v965_v31 = vsel %vm951_vm9, %v962_v12, %v964_v28  ;;  %v2460_v35 = vadd.s32 4294967294, %v1090_v23  ;;  %v1133_v47 = vand.u32 8388607, %v3779_v13  ;;  %v175_v49 = vsel %vm92_vm8, %v174_v7, %v173_v29 }
  0xe1   :  { %v2969_v41 = vmul.u32.u64.low %v966_v15, %v965_v31  ;;  %v2970_v45 = vmul.u32.u64.high %v966_v15, %v965_v31, %v2969_v41  ;;  %v1078_v51 = vadd.s32 %v2870_v43, %v2867_v37  ;;  %v1130_v54 = vshrl.u32 %v1129_v20, 23 }
  0xe2   :  { %v298_v55 = vand.u32 2147483647, %v2884_v60  ;;  %2571 = vcosq.f32 %v282_v21  ;;  %vm2461_vm13 = vcmp.lt.s32.totalorder %v2460_v35, 0  ;;  %v957_v56 = vsel %vm951_vm9, %v954_v24, %v956_v40 }
  0xe3   :  { %v301_v52 = vand.u32 2139095040, %v2884_v60  ;;  %2573 = vsinq.f32 %v282_v21  ;;  %v1093_v11 = vsel %vm2461_vm13, 0, %v2460_v35  ;;  %v976_v57 = vadd.s32 1, %v2966_v5 }
  0xe4   :  { %v2462_v61 = vadd.s32 4294967169, %v1130_v54  ;;  %v178_v63 = vsel %vm2935_vm12, %v2727_v10, %v175_v49  ;;  %v1094_v37 = vsub.s32 32, %v1093_v11  ;;  %v1098_v43 = vsub.s32 4294967266, %v1093_v11 }
  0xe5   :  { %v1134_v58 = vor.u32 8388608, %v1133_v47  ;;  %v973_v29 = vmul.u32 %v966_v15, %v957_v56  ;;  %vm975_vm14 = vc.u32 %v2970_v45, %v2965_v32  ;;  %v2990_v27 = vand.u32 8388607, %v298_v55 }
  0xe6   :  { %v1136_v53 = vadd.s32 1, %v2462_v61  ;;  %v1099_v0 = vadd.s32 127, %v1098_v43  ;;  %v977_v2 = vsel %vm975_vm14, %v976_v57, %v2966_v5  ;;  %v302_v3 = vshrl.u32 %v301_v52, 23 }
  0xe7   :  { %v2994_v8 = vadd.f32 -0.7853982, %v2891_v1  ;;  %2575 = vcosq.f32 %v178_v63  ;;  %v978_v12 = vadd.s32 %v977_v2, %v973_v29  ;;  %v1096_v15 = vshrl.u32 %v1078_v51, %v1094_v37 }
  0xe8   :  { %vm1137_vm15 = vcmp.gt.s32.totalorder %v1136_v53, 0  ;;  %2577 = vsinq.f32 %v178_v63  ;;  %v2996_v18 = vshll.u32 %v1134_v58, 8  ;;  %v1095_v19 = vshll.u32 %v2921_v62, %v1093_v11 }
  0xe9   :  { %v1138_v16 = vsel %vm1137_vm15, %v1136_v53, 0  ;;  %v1100_v7 = vshll.u32 %v1099_v0, 23  ;;  %v979_v14 = vadd.s32 536870912, %v978_v12  ;;  %v2430_v21 = vadd.s32 4294967169, %v302_v3 }
  0xea   :  { %v1140_v38 = vand.u32 31, %v1138_v16  ;;  %v1139_v20 = vshrl.u32 %v1138_v16, 5  ;;  %v306_v23 = vor.u32 8388608, %v2990_v27  ;;  %v3777_v1 = vand.u32 2147483647, %v2994_v8 }
  0xeb   :  { %v3001_v24 = vshrl.u32 %v979_v14, 30  ;;  %v1097_v35 = vor.u32 %v1096_v15, %v1095_v19  ;;  %v1101_v51 = vor.u32 4788187, %v1100_v7  ;;  %v308_v0 = vadd.s32 1, %v2430_v21 }
  0xec   :  { %v1141_v28 = vsub.s32 32, %v1140_v38  ;;  %v1143_v40 = vshll.u32 %v2668_v42, %v1140_v38  ;;  %v1146_v31 = vshll.u32 %v2669_v44, %v1140_v38  ;;  %v3005_v5 = vpop.eup %2571  ;;  %v1149_v62 = vshll.u32 %v2670_v46, %v1140_v38 }
  0xed   :  { %v1152_v41 = vshll.u32 %v2671_v48, %v1140_v38  ;;  %v1155_v47 = vshll.u32 %v3782_v50, %v1140_v38  ;;  %v3010_v49 = vpop.eup %2573  ;;  %v981_v54 = vshll.u32 %v3001_v24, 30  ;;  %vm1158_vm0 = vcmp.lt.s32.totalorder %v1139_v20, 1 }
  0xee   :  { %v1144_v56 = vshrl.u32 %v2669_v44, %v1141_v28  ;;  %v1147_v52 = vshrl.u32 %v2670_v46, %v1141_v28  ;;  %v1142_v11 = vshrl.u32 %v2668_v42, %v1141_v28  ;;  %v1150_v57 = vshrl.u32 %v2671_v48, %v1141_v28 }
  0xef   :  { %v1153_v61 = vshrl.u32 %v3782_v50, %v1141_v28  ;;  %v1156_v63 = vshrl.u32 %v2673_v59, %v1141_v28  ;;  %v3019_v37 = vsub.s32 %v978_v12, %v981_v54  ;;  %v1102_v3 = vand.u32 2147483647, %v1101_v51 }
  0xf0   :  { %v1145_v43 = vor.u32 %v1144_v56, %v1143_v40  ;;  %v1148_v58 = vor.u32 %v1147_v52, %v1146_v31  ;;  %v1151_v29 = vor.u32 %v1150_v57, %v1149_v62  ;;  %vm1161_vm1 = vcmp.lt.s32.totalorder %v1139_v20, 4 }
  0xf1   :  { %v1154_v53 = vor.u32 %v1153_v61, %v1152_v41  ;;  %v1157_v27 = vor.u32 %v1156_v63, %v1155_v47  ;;  %v3021_v2 = vpop.eup %2575  ;;  %v984_v15 = vsub.s32 0, %v3019_v37  ;;  %v1233_v16 = vand.u32 2139095040, %v2994_v8 }
  0xf2   :  { %v3025_v19 = vpop.eup %2577  ;;  %vm1160_vm2 = vcmp.lt.s32.totalorder %v1139_v20, 3  ;;  %v1162_v12 = vsel %vm1158_vm0, %v1142_v11, %v1145_v43  ;;  %v1163_v7 = vsel %vm1161_vm1, %v1151_v29, 2102212464  ;;  %v1166_v14 = vsel %vm1158_vm0, %v1145_v43, %v1148_v58 }
  0xf3   :  { %v2455_v38 = vmin.u32 %v984_v15, %v3019_v37  ;;  %v1164_v28 = vsel %vm1160_vm2, %v1148_v58, %v1163_v7  ;;  %v1167_v21 = vsel %vm1161_vm1, %v1154_v53, 920167782  ;;  %v1170_v40 = vsel %vm1158_vm0, %v1148_v58, %v1151_v29  ;;  %v60_v15 = vpop.permute.xlu1 %59 }
  0xf4   :  { %vm1159_vm3 = vcmp.lt.s32.totalorder %v1139_v20, 2  ;;  %v1168_v31 = vsel %vm1160_vm2, %v1151_v29, %v1167_v21  ;;  %v1171_v62 = vsel %vm1161_vm1, %v1157_v27, 1326507024  ;;  %vm309_vm4 = vcmp.gt.s32.totalorder %v308_v0, 0 }
  0xf5   :  { %v986_v41 = vclz %v2455_v38  ;;  %v1165_v47 = vsel %vm1159_vm3, %v1162_v12, %v1164_v28  ;;  %v1169_v51 = vsel %vm1159_vm3, %v1166_v14, %v1168_v31  ;;  %v1172_v54 = vsel %vm1160_vm2, %v1154_v53, %v1171_v62 }
  0xf6   :  { %v1173_v56 = vsel %vm1159_vm3, %v1170_v40, %v1172_v54  ;;  %v3032_v52 = vmul.u32.u64.low %v2996_v18, %v1169_v51  ;;  %v3033_v11 = vmul.u32.u64.high %v2996_v18, %v1169_v51, %v3032_v52  ;;  %v310_v57 = vsel %vm309_vm4, %v308_v0, 0 }
  0xf7   :  { %v1104_v61 = vcvt.s32.f32 %v1097_v35  ;;  %v2456_v63 = vadd.s32 4294967294, %v986_v41  ;;  %v3037_v43 = vmul.u32.u64.low %v2996_v18, %v1173_v56  ;;  %v3038_v58 = vmul.u32.u64.high %v2996_v18, %v1173_v56, %v3037_v43 }
  0xf8   :  { %v974_v20 = vadd.s32 %v2965_v32, %v2970_v45  ;;  %v3042_v29 = vshrl.u32 %v310_v57, 5  ;;  %v312_v27 = vand.u32 31, %v310_v57  ;;  %v3044_v53 = vshll.u32 %v306_v23, 8 }
  0xf9   :  { %v3046_v12 = vmul.f32 %v1104_v61, %v1102_v3  ;;  %vm2457_vm7 = vcmp.lt.s32.totalorder %v2456_v63, 0  ;;  %v1181_v0 = vmul.u32 %v2996_v18, %v1165_v47  ;;  %v3051_v35 = vand.u32 8388607, %v3777_v1 }
  0xfa   :  { %v989_v7 = vsel %vm2457_vm7, 0, %v2456_v63  ;;  %v1184_v14 = vadd.s32 1, %v3033_v11  ;;  %v313_v38 = vsub.s32 32, %v312_v27  ;;  %v1234_v32 = vshrl.u32 %v1233_v16, 23 }
  0xfb   :  { %v990_v45 = vsub.s32 32, %v989_v7  ;;  %v994_v28 = vsub.s32 4294967266, %v989_v7  ;;  %v315_v23 = vshll.u32 %v2668_v42, %v312_v27  ;;  %v3056_v21 = vmul.f32 %v60_v15, %v2721_v6 }
  0xfc   :  { %vm1183_vm9 = vc.u32 %v3038_v58, %v3032_v52  ;;  %v316_v18 = vshrl.u32 %v2669_v44, %v313_v38  ;;  %v318_v3 = vshll.u32 %v2669_v44, %v312_v27  ;;  %vm330_vm10 = vcmp.lt.s32.totalorder %v3042_v29, 1 }
  0xfd   :  { %v995_v40 = vadd.s32 127, %v994_v28  ;;  %v1185_v31 = vsel %vm1183_vm9, %v1184_v14, %v3033_v11  ;;  %v314_v16 = vshrl.u32 %v2668_v42, %v313_v38  ;;  %v319_v62 = vshrl.u32 %v2670_v46, %v313_v38 }
  0xfe   :  { %v992_v41 = vshrl.u32 %v974_v20, %v990_v45  ;;  %v1186_v47 = vadd.s32 %v1185_v31, %v1181_v0  ;;  %v321_v6 = vshll.u32 %v2670_v46, %v312_v27  ;;  %v322_v51 = vshrl.u32 %v2671_v48, %v313_v38 }
  0xff   :  { %v996_v54 = vshll.u32 %v995_v40, 23  ;;  %v317_v56 = vor.u32 %v316_v18, %v315_v23  ;;  %v320_v57 = vor.u32 %v319_v62, %v318_v3  ;;  %v324_v61 = vshll.u32 %v2671_v48, %v312_v27 }
 0x100   :  { %v1187_v63 = vadd.s32 536870912, %v1186_v47  ;;  %v323_v43 = vor.u32 %v322_v51, %v321_v6  ;;  %v325_v15 = vshrl.u32 %v3782_v50, %v313_v38  ;;  %v327_v11 = vshll.u32 %v3782_v50, %v312_v27 }
 0x101   :  { %v991_v14 = vshll.u32 %v3019_v37, %v989_v7  ;;  %v997_v28 = vor.u32 4788187, %v996_v54  ;;  %v328_v20 = vshrl.u32 %v2673_v59, %v313_v38  ;;  %vm333_vm11 = vcmp.lt.s32.totalorder %v3042_v29, 4 }
 0x102   :  { %v3074_v0 = vshrl.u32 %v1187_v63, 30  ;;  %v326_v45 = vor.u32 %v325_v15, %v324_v61  ;;  %vm331_vm13 = vcmp.lt.s32.totalorder %v3042_v29, 2  ;;  %v335_v23 = vsel %vm333_vm11, %v323_v43, 2102212464 }
 0x103   :  { %v993_v18 = vor.u32 %v992_v41, %v991_v14  ;;  %v329_v3 = vor.u32 %v328_v20, %v327_v11  ;;  %vm332_vm14 = vcmp.lt.s32.totalorder %v3042_v29, 3  ;;  %v338_v37 = vsel %vm330_vm10, %v317_v56, %v320_v57 }
 0x104   :  { %v1189_v27 = vshll.u32 %v3074_v0, 30  ;;  %v334_v7 = vsel %vm330_vm10, %v314_v16, %v317_v56  ;;  %v339_v38 = vsel %vm333_vm11, %v326_v45, 920167782  ;;  %v342_v40 = vsel %vm330_vm10, %v320_v57, %v323_v43 }
 0x105   :  { %v998_v31 = vand.u32 2147483647, %v997_v28  ;;  %v336_v62 = vsel %vm332_vm14, %v320_v57, %v335_v23  ;;  %v340_v41 = vsel %vm332_vm14, %v323_v43, %v339_v38  ;;  %v343_v6 = vsel %vm333_vm11, %v329_v3, 1326507024  ;;  %v38_v57 = vld [vmem:[#allocation2 + $0x28] sm:$0xff]  ;;  %v40_v43 = vld [vmem:[#allocation2 + $0x38] sm:$0xff] }
 0x106   :  { %v3091_v51 = vsub.s32 %v1186_v47, %v1189_v27  ;;  %v341_v54 = vsel %vm331_vm13, %v338_v37, %v340_v41  ;;  %v344_v61 = vsel %vm332_vm14, %v326_v45, %v343_v6  ;;  %v2466_v63 = vadd.s32 4294967169, %v1234_v32 }
 0x107   :  { %v1000_v16 = vcvt.s32.f32 %v993_v18  ;;  %v345_v56 = vsel %vm331_vm13, %v342_v40, %v344_v61  ;;  %v3098_v15 = vmul.u32.u64.low %v3044_v53, %v341_v54  ;;  %v3099_v11 = vmul.u32.u64.high %v3044_v53, %v341_v54, %v3098_v15 }
 0x108   :  { %v1192_v14 = vsub.s32 0, %v3091_v51  ;;  %v3104_v47 = vmul.u32.u64.low %v3044_v53, %v345_v56  ;;  %v3105_v28 = vmul.u32.u64.high %v3044_v53, %v345_v56, %v3104_v47  ;;  %v1240_v20 = vadd.s32 1, %v2466_v63 }
 0x109   :  { %v3107_v45 = vmul.f32 %v1000_v16, %v998_v31  ;;  %v337_v32 = vsel %vm331_vm13, %v334_v7, %v336_v62  ;;  %v1238_v23 = vor.u32 8388608, %v3051_v35  ;;  %v3778_v18 = vand.u32 2147483647, %v3056_v21 }
 0x10a   :  { %v2463_v3 = vmin.u32 %v1192_v14, %v3091_v51  ;;  %vm1241_vm15 = vcmp.gt.s32.totalorder %v1240_v20, 0  ;;  %v405_v37 = vand.u32 2139095040, %v3056_v21  ;;  %v2514_v27 = vpack.c.bf16 %v40_v43, %v38_v57 }
 0x10b   :  { %v1182_v38 = vadd.s32 %v3032_v52, %v3038_v58  ;;  %v356_v40 = vadd.s32 1, %v3099_v11  ;;  %v1242_v31 = vsel %vm1241_vm15, %v1240_v20, 0  ;;  %v3120_v29 = vand.u32 8388607, %v3778_v18 }
 0x10c   :  { %v1194_v7 = vclz %v2463_v3  ;;  %v353_v35 = vmul.u32 %v3044_v53, %v337_v32  ;;  %vm355_vm0 = vc.u32 %v3105_v28, %v3098_v15  ;;  %v1243_v62 = vshrl.u32 %v1242_v31, 5  ;;  %2515 = vmatprep.subr.bf16.mxu1 %v2514_v27 }
 0x10d   :  { %v1002_v41 = vxor.u32 2147483648, %v3107_v45  ;;  %v357_v6 = vsel %vm355_vm0, %v356_v40, %v3099_v11  ;;  %v1244_v52 = vand.u32 31, %v1242_v31  ;;  %v3127_v58 = vshll.u32 %v1238_v23, 8 }
 0x10e   :  { %v2464_v54 = vadd.s32 4294967294, %v1194_v7  ;;  %v358_v61 = vadd.s32 %v357_v6, %v353_v35  ;;  %v3129_v63 = vshrl.u32 %v405_v37, 23  ;;  %v410_v16 = vor.u32 8388608, %v3120_v29 }
 0x10f   :  { %v1245_v56 = vsub.s32 32, %v1244_v52  ;;  %v1247_v53 = vshll.u32 %v2668_v42, %v1244_v52  ;;  %v1250_v57 = vshll.u32 %v2669_v44, %v1244_v52  ;;  %vm1262_vm1 = vcmp.lt.s32.totalorder %v1243_v62, 1 }
 0x110   :  { %vm2465_vm2 = vcmp.lt.s32.totalorder %v2464_v54, 0  ;;  %v359_v43 = vadd.s32 536870912, %v358_v61  ;;  %v1253_v14 = vshll.u32 %v2670_v46, %v1244_v52  ;;  %v1256_v11 = vshll.u32 %v2671_v48, %v1244_v52 }
 0x111   :  { %v1197_v47 = vsel %vm2465_vm2, 0, %v2464_v54  ;;  %v1248_v20 = vshrl.u32 %v2669_v44, %v1245_v56  ;;  %v1251_v32 = vshrl.u32 %v2670_v46, %v1245_v56  ;;  %v1259_v23 = vshll.u32 %v3782_v50, %v1244_v52 }
 0x112   :  { %v1198_v3 = vsub.s32 32, %v1197_v47  ;;  %v1202_v37 = vsub.s32 4294967266, %v1197_v47  ;;  %v3139_v27 = vshrl.u32 %v359_v43, 30  ;;  %v1246_v40 = vshrl.u32 %v2668_v42, %v1245_v56 }
 0x113   :  { %v1249_v31 = vor.u32 %v1248_v20, %v1247_v53  ;;  %v1252_v7 = vor.u32 %v1251_v32, %v1250_v57  ;;  %v1254_v35 = vshrl.u32 %v2671_v48, %v1245_v56  ;;  %v1257_v6 = vshrl.u32 %v3782_v50, %v1245_v56 }
 0x114   :  { %vm920_vm3 = vcmp.lt.s32.totalorder %v2741_v30, 0  ;;  %v1200_v54 = vshrl.u32 %v1182_v38, %v1198_v3  ;;  %v1203_v1 = vadd.s32 127, %v1202_v37  ;;  %v361_v18 = vshll.u32 %v3139_v27, 30 }
 0x115   :  { %v1260_v52 = vshrl.u32 %v2673_v59, %v1245_v56  ;;  %v1199_v13 = vshll.u32 %v3091_v51, %v1197_v47  ;;  %v1255_v43 = vor.u32 %v1254_v35, %v1253_v14  ;;  %v1258_v39 = vor.u32 %v1257_v6, %v1256_v11 }
 0x116   :  { %vm1264_vm4 = vcmp.lt.s32.totalorder %v1243_v62, 3  ;;  %v1204_v22 = vshll.u32 %v1203_v1, 23  ;;  %v3148_v53 = vsub.s32 %v358_v61, %v361_v18  ;;  %vm1265_vm7 = vcmp.lt.s32.totalorder %v1243_v62, 4 }
 0x117   :  { %v1261_v57 = vor.u32 %v1260_v52, %v1259_v23  ;;  %v1201_v20 = vor.u32 %v1200_v54, %v1199_v13  ;;  %v1267_v32 = vsel %vm1265_vm7, %v1255_v43, 2102212464  ;;  %v1270_v50 = vsel %vm1262_vm1, %v1249_v31, %v1252_v7 }
 0x118   :  { %v1271_v38 = vsel %vm1265_vm7, %v1258_v39, 920167782  ;;  %v1205_v3 = vor.u32 4788187, %v1204_v22  ;;  %v364_v37 = vsub.s32 0, %v3148_v53  ;;  %v1266_v56 = vsel %vm1262_vm1, %v1246_v40, %v1249_v31 }
 0x119   :  { %v1268_v51 = vsel %vm1264_vm4, %v1252_v7, %v1267_v32  ;;  %vm1263_vm9 = vcmp.lt.s32.totalorder %v1243_v62, 2  ;;  %v1272_v14 = vsel %vm1264_vm4, %v1255_v43, %v1271_v38  ;;  %v1274_v1 = vsel %vm1262_vm1, %v1252_v7, %v1255_v43  ;;  %v37_v7 = vld [vmem:[#allocation2 + $0x20] sm:$0xff]  ;;  %v39_v43 = vld [vmem:[#allocation2 + $0x30] sm:$0xff] }
 0x11a   :  { %v1275_v18 = vsel %vm1265_vm7, %v1261_v57, 1326507024  ;;  %v1206_v61 = vand.u32 2147483647, %v1205_v3  ;;  %v2431_v13 = vmin.u32 %v364_v37, %v3148_v53  ;;  %v1273_v11 = vsel %vm1263_vm9, %v1270_v50, %v1272_v14 }
 0x11b   :  { %v1276_v47 = vsel %vm1264_vm4, %v1258_v39, %v1275_v18  ;;  %v1269_v23 = vsel %vm1263_vm9, %v1266_v56, %v1268_v51  ;;  %v3159_v35 = vmul.u32.u64.low %v3127_v58, %v1273_v11  ;;  %v3160_v6 = vmul.u32.u64.high %v3127_v58, %v1273_v11, %v3159_v35 }
 0x11c   :  { %v1277_v22 = vsel %vm1263_vm9, %v1274_v1, %v1276_v47  ;;  %v1208_v40 = vcvt.s32.f32 %v1201_v20  ;;  %v366_v31 = vclz %v2431_v13  ;;  %v1106_v57 = vxor.u32 2147483648, %v3046_v12 }
 0x11d   :  { %v3164_v54 = vmul.u32.u64.low %v3127_v58, %v1277_v22  ;;  %v3165_v52 = vmul.u32.u64.high %v3127_v58, %v1277_v22, %v3164_v54  ;;  %v3173_v39 = vsel %vm920_vm3, %v1002_v41, %v3107_v45  ;;  %v2434_v50 = vadd.s32 4294967169, %v3129_v63 }
 0x11e   :  { %v176_v62 = vsub.s32 4, %v2847_v34  ;;  %v3177_v20 = vmul.f32 %v1208_v40, %v1206_v61  ;;  %v354_v32 = vadd.s32 %v3098_v15, %v3105_v28  ;;  %v2432_v38 = vadd.s32 4294967294, %v366_v31 }
 0x11f   :  { %v1285_v3 = vmul.u32 %v3127_v58, %v1269_v23  ;;  %v1288_v37 = vadd.s32 1, %v3160_v6  ;;  %v412_v56 = vadd.s32 1, %v2434_v50  ;;  %v2516_v41 = vpack.c.bf16 %v39_v43, %v37_v7 }
 0x120   :  { %v177_v45 = vsel %vm92_vm8, %v176_v62, %v2847_v34  ;;  %vm2433_vm10 = vcmp.lt.s32.totalorder %v2432_v38, 0  ;;  %vm1287_vm11 = vc.u32 %v3165_v52, %v3159_v35  ;;  %v3190_v63 = vshll.u32 %v410_v16, 8 }
 0x121   :  { %v187_v15 = vxor.u32 2147483648, %v3025_v19  ;;  %v369_v28 = vsel %vm2433_vm10, 0, %v2432_v38  ;;  %v1289_v58 = vsel %vm1287_vm11, %v1288_v37, %v3160_v6  ;;  %vm413_vm13 = vcmp.gt.s32.totalorder %v412_v56, 0  ;;  %2517 = vmatpush1.bf16.msra.mxu1 %v2516_v41 }
 0x122   :  { %v179_v51 = vsel %vm2935_vm12, 0, %v177_v45  ;;  %v1210_v34 = vxor.u32 2147483648, %v3177_v20  ;;  %v370_v14 = vsub.s32 32, %v369_v28  ;;  %v374_v1 = vsub.s32 4294967266, %v369_v28 }
 0x123   :  { %v1290_v18 = vadd.s32 %v1289_v58, %v1285_v3  ;;  %v371_v61 = vshll.u32 %v3148_v53, %v369_v28  ;;  %v414_v29 = vsel %vm413_vm13, %v412_v56, 0  ;;  %v183_v16 = vadd.s32 3, %v179_v51 }
 0x124   :  { %v372_v13 = vshrl.u32 %v354_v32, %v370_v14  ;;  %v375_v11 = vadd.s32 127, %v374_v1  ;;  %v3198_v23 = vshrl.u32 %v414_v29, 5  ;;  %v2674_v22 = vmov 0.0  }
 0x125   :  { %v1291_v47 = vadd.s32 536870912, %v1290_v18  ;;  %2128 = vmatprep.mubr.f32.mxu1 %v2674_v22  ;;  %1991 = vmatprep.mubr.f32.mxu0 %v2674_v22  ;;  %v416_v4 = vand.u32 31, %v414_v29  ;;  %v3202_v6 = vand.u32 3, %v183_v16  ;;  %v190_v40 = vxor.u32 2147483648, %v3021_v2 }
 0x126   :  { %v3205_v31 = vand.u32 3, %v179_v51  ;;  %v373_v53 = vor.u32 %v372_v13, %v371_v61  ;;  %v376_v54 = vshll.u32 %v375_v11, 23  ;;  %vm434_vm8 = vcmp.lt.s32.totalorder %v3198_v23, 1 }
 0x127   :  { %v3207_v7 = vshrl.u32 %v1291_v47, 30  ;;  %vm300_vm12 = vcmp.lt.s32.totalorder %v2884_v60, 0  ;;  %v417_v43 = vsub.s32 32, %v416_v4  ;;  %v419_v50 = vshll.u32 %v2668_v42, %v416_v4 }
 0x128   :  { %v422_v62 = vshll.u32 %v2669_v44, %v416_v4  ;;  %v425_v32 = vshll.u32 %v2670_v46, %v416_v4  ;;  %v377_v38 = vor.u32 4788187, %v376_v54  ;;  %v380_v3 = vcvt.s32.f32 %v373_v53 }
 0x129   :  { %v1293_v37 = vshll.u32 %v3207_v7, 30  ;;  %v428_v56 = vshll.u32 %v2671_v48, %v416_v4  ;;  %vm3218_vm14 = vcmp.le.f32.partialorder %v298_v55, 0.7853982  ;;  %v418_v41 = vshrl.u32 %v2668_v42, %v417_v43 }
 0x12a   :  { %v420_v28 = vshrl.u32 %v2669_v44, %v417_v43  ;;  %v423_v58 = vshrl.u32 %v2670_v46, %v417_v43  ;;  %v426_v51 = vshrl.u32 %v2671_v48, %v417_v43  ;;  %v378_v14 = vand.u32 2147483647, %v377_v38 }
 0x12b   :  { %v3226_v1 = vsub.s32 %v1290_v18, %v1293_v37  ;;  %v3790_v61 = vmov 920167782   ;;  %v432_v47 = vshrl.u32 %v2673_v59, %v417_v43  ;;  %vm435_vm15 = vcmp.lt.s32.totalorder %v3198_v23, 2 }
 0x12c   :  { %v429_v29 = vshrl.u32 %v3790_v61, %v417_v43  ;;  %v431_v16 = vshll.u32 %v3790_v61, %v416_v4  ;;  %v421_v13 = vor.u32 %v420_v28, %v419_v50  ;;  %v424_v55 = vor.u32 %v423_v58, %v422_v62 }
 0x12d   :  { %v427_v11 = vor.u32 %v426_v51, %v425_v32  ;;  %v381_v53 = vmul.f32 %v380_v3, %v378_v14  ;;  %v1296_v42 = vsub.s32 0, %v3226_v1  ;;  %vm436_vm0 = vcmp.lt.s32.totalorder %v3198_v23, 3 }
 0x12e   :  { %v430_v44 = vor.u32 %v429_v29, %v428_v56  ;;  %v433_v46 = vor.u32 %v432_v47, %v431_v16  ;;  %vm437_vm1 = vcmp.lt.s32.totalorder %v3198_v23, 4  ;;  %v438_v48 = vsel %vm434_vm8, %v418_v41, %v421_v13 }
 0x12f   :  { %v382_v18 = vxor.u32 2147483648, %v381_v53  ;;  %v2467_v4 = vmin.u32 %v1296_v42, %v3226_v1  ;;  %v439_v54 = vsel %vm437_vm1, %v427_v11, 2102212464  ;;  %v442_v59 = vsel %vm434_vm8, %v421_v13, %v424_v55 }
 0x130   :  { %v440_v43 = vsel %vm436_vm0, %v424_v55, %v439_v54  ;;  %v443_v50 = vsel %vm437_vm1, %v430_v44, 920167782  ;;  %v446_v62 = vsel %vm434_vm8, %v424_v55, %v427_v11  ;;  %v447_v32 = vsel %vm437_vm1, %v433_v46, 1326507024 }
 0x131   :  { %vm182_vm2 = vweird.f32 %v2727_v10  ;;  %v383_v38 = vsel %vm300_vm12, %v382_v18, %v381_v53  ;;  %v1298_v3 = vclz %v2467_v4  ;;  %v441_v37 = vsel %vm435_vm15, %v438_v48, %v440_v43 }
 0x132   :  { %v444_v56 = vsel %vm436_vm0, %v427_v11, %v443_v50  ;;  %vm1750_vm4 = vcmask 130048   ;;  %v1286_v41 = vadd.s32 %v3159_v35, %v3165_v52  ;;  %v448_v58 = vsel %vm436_vm0, %v430_v44, %v447_v32 }
 0x133   :  { %v445_v28 = vsel %vm435_vm15, %v442_v59, %v444_v56  ;;  %vm600_vm7 = vcmp.lt.s32.totalorder %v3205_v31, 2  ;;  %v386_v51 = vsel %vm3218_vm14, %v2884_v60, %v383_v38  ;;  %v2468_v14 = vadd.s32 4294967294, %v1298_v3 }
 0x134   :  { %v449_v61 = vsel %vm435_vm15, %v446_v62, %v448_v58  ;;  %vm601_vm9 = vcmp.eq.s32.totalorder %v3205_v31, 0  ;;  %v457_v29 = vmul.u32 %v3190_v63, %v441_v37  ;;  %vm186_vm10 = vcmp.eq.s32.totalorder %v3202_v6, 0 }
 0x135   :  { %v3265_v35 = vmul.u32.u64.low %v3190_v63, %v449_v61  ;;  %v3266_v52 = vmul.u32.u64.high %v3190_v63, %v449_v61, %v3265_v35  ;;  %vm2469_vm11 = vcmp.lt.s32.totalorder %v2468_v14, 0  ;;  %v188_v23 = vsel %vm186_vm10, %v3021_v2, %v187_v15 }
 0x136   :  { %v3271_v16 = vmul.u32.u64.low %v3190_v63, %v445_v28  ;;  %v3272_v13 = vmul.u32.u64.high %v3190_v63, %v445_v28, %v3271_v16  ;;  %v1301_v55 = vsel %vm2469_vm11, 0, %v2468_v14  ;;  %vm185_vm13 = vcmp.lt.s32.totalorder %v3202_v6, 2 }
 0x137   :  { %vm189_vm8 = vcmp.eq.s32.totalorder %v3202_v6, 2  ;;  %v603_v11 = vsel %vm601_vm9, %v3021_v2, %v187_v15  ;;  %v1302_v47 = vsub.s32 32, %v1301_v55  ;;  %v1306_v53 = vsub.s32 4294967266, %v1301_v55 }
 0x138   :  { %v191_v63 = vsel %vm189_vm8, %v190_v40, %v3025_v19  ;;  %vm604_vm15 = vcmp.eq.s32.totalorder %v3205_v31, 2  ;;  %v1303_v42 = vshll.u32 %v3226_v1, %v1301_v55  ;;  %vm459_vm0 = vc.u32 %v3266_v52, %v3271_v16 }
 0x139   :  { %v192_v44 = vsel %vm185_vm13, %v188_v23, %v191_v63  ;;  %v606_v6 = vsel %vm604_vm15, %v190_v40, %v3025_v19  ;;  %v1304_v46 = vshrl.u32 %v1286_v41, %v1302_v47  ;;  %v1307_v15 = vadd.s32 127, %v1306_v53 }
 0x13a   :  { %v460_v48 = vadd.s32 1, %v3272_v13  ;;  %v3296_v18 = vsel %vm182_vm2, nan, %v192_v44  ;;  %2579 = vcosq.f32 %v386_v51  ;;  %v607_v1 = vsel %vm600_vm7, %v603_v11, %v606_v6 }
 0x13b   :  { %v1746_v4 = vmul.f32 %v3296_v18, %v3296_v18  ;;  %v280_v54 = vsub.s32 4, %v2819_v17  ;;  %v1305_v59 = vor.u32 %v1304_v46, %v1303_v42  ;;  %v1308_v2 = vshll.u32 %v1307_v15, 23 }
 0x13c   :  { %v461_v19 = vsel %vm459_vm0, %v460_v48, %v3272_v13  ;;  %v3306_v40 = vsel %vm182_vm2, nan, %v607_v1  ;;  %vm286_vm1 = vweird.f32 %v2724_v9  ;;  %2581 = vsinq.f32 %v386_v51 }
 0x13d   :  { %v462_v43 = vadd.s32 %v461_v19, %v457_v29  ;;  %v1779_v50 = vmul.f32 %v3306_v40, %v3296_v18  ;;  %v1751_v31 = vsel %vm1750_vm4, %v1746_v4, 0.0  ;;  %v281_v62 = vsel %vm196_vm5, %v280_v54, %v2819_v17 }
 0x13e   :  { %v1309_v32 = vor.u32 4788187, %v1308_v2  ;;  %1752 = vadd.xlane.f32.xlu0 %v1751_v31  ;;  %v283_v10 = vsel %vm2909_vm6, 0, %v281_v62  ;;  %v291_v38 = vxor.u32 2147483648, %v3010_v49  ;;  %vm1024_vm2 = vcmp.lt.s32.totalorder %v2739_v25, 0 }
 0x13f   :  { %v463_v3 = vadd.s32 536870912, %v462_v43  ;;  %v1783_v37 = vsel %vm1750_vm4, %v1779_v50, 0.0  ;;  %v287_v56 = vadd.s32 3, %v283_v10  ;;  %v702_v41 = vand.u32 3, %v283_v10 }
 0x140   :  { %v1310_v28 = vand.u32 2147483647, %v1309_v32  ;;  %v1312_v58 = vcvt.s32.f32 %v1305_v59  ;;  %1784 = vadd.xlane.f32.xlu1 %v1783_v37  ;;  %v294_v17 = vxor.u32 2147483648, %v3005_v5  ;;  %v1763_v51 = vmul.f32 %v3306_v40, %v3306_v40 }
 0x141   :  { %v3323_v14 = vshrl.u32 %v463_v3, 30  ;;  %v288_v36 = vand.u32 3, %v287_v56  ;;  %vm704_vm5 = vcmp.eq.s32.totalorder %v702_v41, 0  ;;  %v1004_v61 = vsub.s32 4, %v3001_v24 }
 0x142   :  { %vm703_vm6 = vcmp.lt.s32.totalorder %v702_v41, 2  ;;  %v706_v35 = vsel %vm704_vm5, %v3005_v5, %v291_v38  ;;  %v1767_v29 = vsel %vm1750_vm4, %v1763_v51, 0.0  ;;  %v3791_v13 = vand.u32 2147483647, %v2741_v30 }
 0x143   :  { %v465_v55 = vshll.u32 %v3323_v14, 30  ;;  %vm290_vm9 = vcmp.eq.s32.totalorder %v288_v36, 0  ;;  %vm293_vm10 = vcmp.eq.s32.totalorder %v288_v36, 2  ;;  %vm707_vm11 = vcmp.eq.s32.totalorder %v702_v41, 2  ;;  %1768 = vadd.xlane.f32.xlu0 %v1767_v29 }
 0x144   :  { %vm3330_vm7 = vcmp.le.f32.partialorder %v3791_v13, 0.7853982  ;;  %vm289_vm13 = vcmp.lt.s32.totalorder %v288_v36, 2  ;;  %v292_v11 = vsel %vm290_vm9, %v3005_v5, %v291_v38  ;;  %v295_v47 = vsel %vm293_vm10, %v294_v17, %v3010_v49  ;;  %v3338_v63 = vpop.eup %2579 }
 0x145   :  { %v709_v53 = vsel %vm707_vm11, %v294_v17, %v3010_v49  ;;  %v3340_v42 = vsub.s32 %v462_v43, %v465_v55  ;;  %v296_v44 = vsel %vm289_vm13, %v292_v11, %v295_v47  ;;  %v1005_v46 = vsel %vm920_vm3, %v1004_v61, %v3001_v24 }
 0x146   :  { %v710_v6 = vsel %vm703_vm6, %v706_v35, %v709_v53  ;;  %v3346_v15 = vmul.f32 %v1312_v58, %v1310_v28  ;;  %v3350_v5 = vsel %vm286_vm1, nan, %v296_v44  ;;  %v1006_v48 = vsel %vm3330_vm7, %v2741_v30, %v3173_v39  ;;  %v3367_v54 = vpop.eup %2581 }
 0x147   :  { %v3354_v49 = vsel %vm286_vm1, nan, %v710_v6  ;;  %v468_v1 = vsub.s32 0, %v3340_v42  ;;  %v3365_v4 = vsel %vm3330_vm7, 0, %v1005_v46  ;;  %2583 = vcosq.f32 %v1006_v48 }
 0x148   :  { %v1780_v24 = vmul.f32 %v3354_v49, %v3350_v5  ;;  %v1107_v9 = vsel %vm1024_vm2, %v1106_v57, %v3046_v12  ;;  %vm1128_vm3 = vcmp.lt.s32.totalorder %v2916_v26, 0  ;;  %2585 = vsinq.f32 %v1006_v48 }
 0x149   :  { %v3376_v39 = vand.u32 3, %v3365_v4  ;;  %v2435_v59 = vmin.u32 %v468_v1, %v3340_v42  ;;  %v1747_v19 = vmul.f32 %v3350_v5, %v3350_v5  ;;  %v1764_v43 = vmul.f32 %v3354_v49, %v3354_v49 }
 0x14a   :  { %v1786_v2 = vsel %vm1750_vm4, %v1780_v24, 0.0  ;;  %v1211_v12 = vsel %vm1128_vm3, %v1210_v34, %v3177_v20  ;;  %v1314_v57 = vxor.u32 2147483648, %v3346_v15  ;;  %v458_v50 = vadd.s32 %v3271_v16, %v3266_v52 }
 0x14b   :  { %1787 = vadd.xlane.f32.xlu1 %v1786_v2  ;;  %v3794_v31 = vand.u32 2147483647, %v2739_v25  ;;  %v470_v32 = vclz %v2435_v59  ;;  %v1770_v10 = vsel %vm1750_vm4, %v1764_v43, 0.0  ;;  %v1108_v38 = vsub.s32 4, %v2904_v33 }
 0x14c   :  { %vm1429_vm15 = vcmp.eq.s32.totalorder %v3376_v39, 0  ;;  %vm1432_vm0 = vcmp.eq.s32.totalorder %v3376_v39, 2  ;;  %1771 = vadd.xlane.f32.xlu0 %v1770_v10  ;;  %v384_v34 = vsub.s32 4, %v3139_v27  ;;  %vm1428_vm1 = vcmp.lt.s32.totalorder %v3376_v39, 2 }
 0x14d   :  { %vm3394_vm8 = vcmp.le.f32.partialorder %v3794_v31, 0.7853982  ;;  %v2436_v52 = vadd.s32 4294967294, %v470_v32  ;;  %v1754_v16 = vsel %vm1750_vm4, %v1747_v19, 0.0  ;;  %v1109_v3 = vsel %vm1024_vm2, %v1108_v38, %v2904_v33 }
 0x14e   :  { %v1110_v20 = vsel %vm3394_vm8, %v2739_v25, %v1107_v9  ;;  %vm1010_vm5 = vweird.f32 %v2741_v30  ;;  %v3414_v37 = vsel %vm3394_vm8, 0, %v1109_v3  ;;  %v385_v56 = vsel %vm300_vm12, %v384_v34, %v3139_v27 }
 0x14f   :  { %2587 = vcosq.f32 %v1110_v20  ;;  %1755 = vadd.xlane.f32.xlu1 %v1754_v16  ;;  %v395_v41 = vxor.u32 2147483648, %v3367_v54  ;;  %v398_v28 = vxor.u32 2147483648, %v3338_v63  ;;  %vm2437_vm6 = vcmp.lt.s32.totalorder %v2436_v52, 0 }
 0x150   :  { %2589 = vsinq.f32 %v1110_v20  ;;  %v1530_v58 = vand.u32 3, %v3414_v37  ;;  %v387_v33 = vsel %vm3218_vm14, 0, %v385_v56  ;;  %v3797_v17 = vand.u32 2147483647, %v2916_v26 }
 0x151   :  { %v473_v36 = vsel %vm2437_vm6, 0, %v2436_v52  ;;  %vm390_vm7 = vweird.f32 %v2884_v60  ;;  %v391_v27 = vadd.s32 3, %v387_v33  ;;  %v805_v61 = vand.u32 3, %v387_v33  ;;  %v3432_v29 = vpop.eup %2583 }
 0x152   :  { %vm3426_vm2 = vcmp.le.f32.partialorder %v3797_v17, 0.7853982  ;;  %v1212_v35 = vsub.s32 4, %v3074_v0  ;;  %v474_v13 = vsub.s32 32, %v473_v36  ;;  %v475_v23 = vshll.u32 %v3340_v42, %v473_v36  ;;  %v3438_v11 = vpop.eup %2585 }
 0x153   :  { %v478_v45 = vsub.s32 4294967266, %v473_v36  ;;  %v1214_v55 = vsel %vm3426_vm2, %v2916_v26, %v1211_v12  ;;  %v1018_v47 = vxor.u32 2147483648, %v3432_v29  ;;  %vm1531_vm12 = vcmp.lt.s32.totalorder %v1530_v58, 2 }
 0x154   :  { %vm1532_vm14 = vcmp.eq.s32.totalorder %v1530_v58, 0  ;;  %vm1535_vm9 = vcmp.eq.s32.totalorder %v1530_v58, 2  ;;  %v392_v53 = vand.u32 3, %v391_v27  ;;  %v476_v44 = vshrl.u32 %v458_v50, %v474_v13 }
 0x155   :  { %v479_v6 = vadd.s32 127, %v478_v45  ;;  %v1015_v46 = vxor.u32 2147483648, %v3438_v11  ;;  %vm806_vm11 = vcmp.lt.s32.totalorder %v805_v61, 2  ;;  %v1434_v42 = vsel %vm1432_vm0, %v1018_v47, %v3438_v11 }
 0x156   :  { %vm393_vm13 = vcmp.lt.s32.totalorder %v392_v53, 2  ;;  %vm394_vm8 = vcmp.eq.s32.totalorder %v392_v53, 0  ;;  %vm397_vm6 = vcmp.eq.s32.totalorder %v392_v53, 2  ;;  %v477_v48 = vor.u32 %v476_v44, %v475_v23 }
 0x157   :  { %v480_v1 = vshll.u32 %v479_v6, 23  ;;  %v1431_v24 = vsel %vm1429_vm15, %v3432_v29, %v1015_v46  ;;  %v396_v9 = vsel %vm394_vm8, %v3338_v63, %v395_v41  ;;  %v399_v19 = vsel %vm397_vm6, %v398_v28, %v3367_v54 }
 0x158   :  { %v1435_v2 = vsel %vm1428_vm1, %v1431_v24, %v1434_v42  ;;  %vm807_vm0 = vcmp.eq.s32.totalorder %v805_v61, 0  ;;  %vm810_vm10 = vcmp.eq.s32.totalorder %v805_v61, 2  ;;  %v484_v50 = vcvt.s32.f32 %v477_v48 }
 0x159   :  { %v3454_v59 = vpop.eup %2587  ;;  %v481_v12 = vor.u32 4788187, %v480_v1  ;;  %v3463_v31 = vsel %vm1010_vm5, nan, %v1435_v2  ;;  %v400_v32 = vsel %vm393_vm13, %v396_v9, %v399_v19  ;;  %v809_v10 = vsel %vm807_vm0, %v3338_v63, %v395_v41 }
 0x15a   :  { %v3459_v43 = vpop.eup %2589  ;;  %v1122_v62 = vxor.u32 2147483648, %v3454_v59  ;;  %2494 = vmatmul.mubr.msk.f32.vlgmr.msra.gmra.mrb[0].mxu1 %vm1750_vm4, %v3463_v31  ;;  %v812_v38 = vsel %vm810_vm10, %v398_v28, %v3367_v54  ;;  %v3479_v52 = vsel %vm390_vm7, nan, %v400_v32  ;;  %v1213_v3 = vsel %vm1128_vm3, %v1212_v35, %v3074_v0 }
 0x15b   :  { %v1119_v39 = vxor.u32 2147483648, %v3459_v43  ;;  %v482_v20 = vand.u32 2147483647, %v481_v12  ;;  %2134 = vmatprep.mubr.f32.mxu1 %v2674_v22  ;;  %v813_v16 = vsel %vm806_vm11, %v809_v10, %v812_v38  ;;  %2591 = vcosq.f32 %v1214_v55 }
 0x15c   :  { %v1537_v34 = vsel %vm1535_vm9, %v1122_v62, %v3459_v43  ;;  %v3488_v54 = vsel %vm390_vm7, nan, %v813_v16  ;;  %vm1232_vm15 = vcmp.lt.s32.totalorder %v2994_v8, 0  ;;  %vm404_vm1 = vcmp.lt.s32.totalorder %v3056_v21, 0 }
 0x15d   :  { %v1534_v63 = vsel %vm1532_vm14, %v3454_v59, %v1119_v39  ;;  %v485_v56 = vmul.f32 %v484_v50, %v482_v20  ;;  %v1781_v28 = vmul.f32 %v3488_v54, %v3479_v52  ;;  %v1765_v33 = vmul.f32 %v3488_v54, %v3488_v54 }
 0x15e   :  { %v1538_v41 = vsel %vm1531_vm12, %v1534_v63, %v1537_v34  ;;  %vm3800_vm7 = vweird.f32 %v2739_v25  ;;  %2593 = vsinq.f32 %v1214_v55  ;;  %v1315_v0 = vsel %vm1232_vm15, %v1314_v57, %v3346_v15 }
 0x15f   :  { %v3502_v60 = vsel %vm3800_vm7, nan, %v1538_v41  ;;  %v486_v58 = vxor.u32 2147483648, %v485_v56  ;;  %v1789_v17 = vsel %vm1750_vm4, %v1781_v28, 0.0  ;;  %v1215_v36 = vsel %vm3426_vm2, 0, %v1213_v3 }
 0x160   :  { %2495 = vmatmul.mubr.msk.f32.gmra.mrb[2].mxu1 %vm1750_vm4, %v3502_v60  ;;  %1790 = vadd.xlane.f32.xlu1 %v1789_v17  ;;  %v1773_v27 = vsel %vm1750_vm4, %v1765_v33, 0.0  ;;  %v1748_v61 = vmul.f32 %v3479_v52, %v3479_v52  ;;  %v1795_v15 = vmul.f32 %v3463_v31, %v3463_v31  ;;  %v1316_v57 = vsub.s32 4, %v3207_v7 }
 0x161   :  { %2140 = vmatprep.mubr.f32.mxu1 %v2674_v22  ;;  %v3801_v35 = vand.u32 2147483647, %v3056_v21  ;;  %v487_v51 = vsel %vm404_vm1, %v486_v58, %v485_v56  ;;  %1774 = vadd.xlane.f32.xlu0 %v1773_v27  ;;  %v1633_v45 = vand.u32 3, %v1215_v36  ;;  %v3804_v55 = vand.u32 2147483647, %v2994_v8 }
 0x162   :  { %v1317_v53 = vsel %vm1232_vm15, %v1316_v57, %v3207_v7  ;;  %v1757_v44 = vsel %vm1750_vm4, %v1748_v61, 0.0  ;;  %v1799_v48 = vsel %vm1750_vm4, %v1795_v15, 0.0  ;;  %v488_v1 = vsub.s32 4, %v3323_v14 }
 0x163   :  { %vm3523_vm3 = vcmp.le.f32.partialorder %v3801_v35, 0.7853982  ;;  %vm1231_vm2 = vcmp.le.f32.partialorder %v3804_v55, 0.7853982  ;;  %v1011_v7 = vadd.s32 3, %v3365_v4  ;;  %v1115_v9 = vadd.s32 3, %v3414_v37 }
 0x164   :  { %v490_v23 = vsel %vm3523_vm3, %v3056_v21, %v487_v51  ;;  %v1318_v6 = vsel %vm1231_vm2, %v2994_v8, %v1315_v0  ;;  %v3539_v42 = vsel %vm1231_vm2, 0, %v1317_v53  ;;  %1758 = vadd.xlane.f32.xlu1 %v1757_v44  ;;  %vm1218_vm12 = vweird.f32 %v2916_v26 }
 0x165   :  { %2595 = vcosq.f32 %v490_v23  ;;  %1800 = vadd.xlane.f32.xlu0 %v1799_v48  ;;  %v3544_v24 = vand.u32 3, %v3539_v42  ;;  %v3548_v2 = vpop.eup %2591  ;;  %vm1634_vm14 = vcmp.lt.s32.totalorder %v1633_v45, 2  ;;  %vm1635_vm9 = vcmp.eq.s32.totalorder %v1633_v45, 0 }
 0x166   :  { %2597 = vsinq.f32 %v490_v23  ;;  %v1226_v19 = vxor.u32 2147483648, %v3548_v2  ;;  %vm1638_vm10 = vcmp.eq.s32.totalorder %v1633_v45, 2  ;;  %v489_v12 = vsel %vm404_vm1, %v488_v1, %v3323_v14 }
 0x167   :  { %2599 = vcosq.f32 %v1318_v6  ;;  %v1012_v50 = vand.u32 3, %v1011_v7  ;;  %v491_v4 = vsel %vm3523_vm3, 0, %v489_v12  ;;  %v3561_v37 = vmul.f32 %v3502_v60, %v3502_v60 }
 0x168   :  { %2601 = vsinq.f32 %v1318_v6  ;;  %v3555_v32 = vpop.eup %2593  ;;  %v1116_v10 = vand.u32 3, %v1115_v9  ;;  %v1219_v38 = vadd.s32 3, %v1215_v36  ;;  %vm1741_vm11 = vcmp.eq.s32.totalorder %v3544_v24, 2 }
 0x169   :  { %v1223_v20 = vxor.u32 2147483648, %v3555_v32  ;;  %v1640_v34 = vsel %vm1638_vm10, %v1226_v19, %v3555_v32  ;;  %v495_v14 = vadd.s32 3, %v491_v4  ;;  %v908_v16 = vand.u32 3, %v491_v4 }
 0x16a   :  { %vm1738_vm13 = vcmp.eq.s32.totalorder %v3544_v24, 0  ;;  %vm1013_vm6 = vcmp.lt.s32.totalorder %v1012_v50, 2  ;;  %vm1014_vm0 = vcmp.eq.s32.totalorder %v1012_v50, 0  ;;  %vm1017_vm15 = vcmp.eq.s32.totalorder %v1012_v50, 2 }
 0x16b   :  { %vm1117_vm1 = vcmp.lt.s32.totalorder %v1116_v10, 2  ;;  %v1637_v63 = vsel %vm1635_vm9, %v3548_v2, %v1223_v20  ;;  %v496_v3 = vand.u32 3, %v495_v14  ;;  %vm909_vm7 = vcmp.lt.s32.totalorder %v908_v16, 2 }
 0x16c   :  { %vm910_vm3 = vcmp.eq.s32.totalorder %v908_v16, 0  ;;  %v1641_v56 = vsel %vm1634_vm14, %v1637_v63, %v1640_v34  ;;  %vm913_vm2 = vcmp.eq.s32.totalorder %v908_v16, 2  ;;  %v1016_v41 = vsel %vm1014_vm0, %v3432_v29, %v1015_v46 }
 0x16d   :  { %v1019_v28 = vsel %vm1017_vm15, %v1018_v47, %v3438_v11  ;;  %v3583_v0 = vsel %vm1218_vm12, nan, %v1641_v56  ;;  %vm497_vm9 = vcmp.lt.s32.totalorder %v496_v3, 2  ;;  %vm498_vm10 = vcmp.eq.s32.totalorder %v496_v3, 0 }
 0x16e   :  { %vm501_vm8 = vcmp.eq.s32.totalorder %v496_v3, 2  ;;  %2496 = vmatmul.mubr.msk.f32.gmra.mrb[4].mxu1 %vm1750_vm4, %v3583_v0  ;;  %v1020_v36 = vsel %vm1013_vm6, %v1016_v41, %v1019_v28  ;;  %vm1118_vm14 = vcmp.eq.s32.totalorder %v1116_v10, 0  ;;  %vm1121_vm0 = vcmp.eq.s32.totalorder %v1116_v10, 2 }
 0x16f   :  { %v2596_v33 = vpop.eup %2595  ;;  %2146 = vmatprep.mubr.f32.mxu1 %v2674_v22  ;;  %v1021_v11 = vsel %vm1010_vm5, nan, %v1020_v36  ;;  %v1120_v47 = vsel %vm1118_vm14, %v3454_v59, %v1119_v39  ;;  %v1123_v27 = vsel %vm1121_vm0, %v1122_v62, %v3459_v43  ;;  %vm1737_vm5 = vcmp.lt.s32.totalorder %v3544_v24, 2 }
 0x170   :  { %v2598_v58 = vpop.eup %2597  ;;  %v502_v17 = vxor.u32 2147483648, %v2596_v33  ;;  %v1811_v13 = vmul.f32 %v1021_v11, %v1021_v11  ;;  %v1124_v45 = vsel %vm1117_vm1, %v1120_v47, %v1123_v27  ;;  %vm3807_vm15 = vweird.f32 %v2739_v25  ;;  %v34_v27 = vld [vmem:[#allocation2 + $0x8] sm:$0xff] }
 0x171   :  { %v2600_v46 = vpop.eup %2599  ;;  %v499_v29 = vxor.u32 2147483648, %v2598_v58  ;;  %v1125_v1 = vsel %vm3807_vm15, nan, %v1124_v45  ;;  %v1220_v7 = vand.u32 3, %v1219_v38  ;;  %v1323_v9 = vadd.s32 3, %v3539_v42 }
 0x172   :  { %v2602_v61 = vpop.eup %2601  ;;  %v1330_v15 = vxor.u32 2147483648, %v2600_v46  ;;  %v503_v57 = vsel %vm501_vm8, %v502_v17, %v2598_v58  ;;  %v915_v35 = vsel %vm913_vm2, %v502_v17, %v2598_v58  ;;  %v1815_v43 = vsel %vm1750_vm4, %v1811_v13, 0.0 }
 0x173   :  { %v1327_v51 = vxor.u32 2147483648, %v2602_v61  ;;  %v500_v23 = vsel %vm498_vm10, %v2596_v33, %v499_v29  ;;  %v912_v30 = vsel %vm910_vm3, %v2596_v33, %v499_v29  ;;  %vm3805_vm8 = vweird.f32 %v3056_v21  ;;  %1816 = vadd.xlane.f32.xlu0 %v1815_v43 }
 0x174   :  { %v1743_v39 = vsel %vm1741_vm11, %v1330_v15, %v2602_v61  ;;  %v504_v55 = vsel %vm497_vm9, %v500_v23, %v503_v57  ;;  %v916_v59 = vsel %vm909_vm7, %v912_v30, %v915_v35  ;;  %vm3806_vm6 = vmmov %vm3805_vm8  ;;  %vm1322_vm11 = vweird.f32 %v2994_v8  ;;  %v35_v35 = vld [vmem:[#allocation2 + $0x10] sm:$0xff] }
 0x175   :  { %v1740_v62 = vsel %vm1738_vm13, %v2600_v46, %v1327_v51  ;;  %v3611_v53 = vsel %vm3805_vm8, nan, %v504_v55  ;;  %v3615_v44 = vsel %vm3806_vm6, nan, %v916_v59  ;;  %v1802_v25 = vsel %vm1750_vm4, %v3561_v37, 0.0 }
 0x176   :  { %v1744_v6 = vsel %vm1737_vm5, %v1740_v62, %v1743_v39  ;;  %v1782_v48 = vmul.f32 %v3615_v44, %v3611_v53  ;;  %v1749_v12 = vmul.f32 %v3611_v53, %v3611_v53  ;;  %v1812_v50 = vmul.f32 %v1125_v1, %v1125_v1 }
 0x177   :  { %v1745_v24 = vsel %vm1322_vm11, nan, %v1744_v6  ;;  %vm1222_vm13 = vcmp.eq.s32.totalorder %v1220_v7, 0  ;;  %vm1225_vm1 = vcmp.eq.s32.totalorder %v1220_v7, 2  ;;  %1803 = vadd.xlane.f32.xlu0 %v1802_v25  ;;  %vm1221_vm7 = vcmp.lt.s32.totalorder %v1220_v7, 2 }
 0x178   :  { %2497 = vmatmul.mubr.msk.f32.gmra.mrb[6].mxu1 %vm1750_vm4, %v1745_v24  ;;  %v1792_v21 = vsel %vm1750_vm4, %v1782_v48, 0.0  ;;  %v1224_v42 = vsel %vm1222_vm13, %v3548_v2, %v1223_v20  ;;  %v1227_v4 = vsel %vm1225_vm1, %v1226_v19, %v3555_v32  ;;  %v1324_v38 = vand.u32 3, %v1323_v9 }
 0x179   :  { %2152 = vmatprep.mubr.f32.mxu1 %v2674_v22  ;;  %1793 = vadd.xlane.f32.xlu1 %v1792_v21  ;;  %v1228_v10 = vsel %vm1221_vm7, %v1224_v42, %v1227_v4  ;;  %v1760_v34 = vsel %vm1750_vm4, %v1749_v12, 0.0  ;;  %v1827_v37 = vmul.f32 %v3463_v31, %v1021_v11  ;;  %v1818_v14 = vsel %vm1750_vm4, %v1812_v50, 0.0 }
 0x17a   :  { %v1797_v20 = vmul.f32 %v3583_v0, %v3583_v0  ;;  %v1229_v2 = vsel %vm1218_vm12, nan, %v1228_v10  ;;  %vm1326_vm3 = vcmp.eq.s32.totalorder %v1324_v38, 0  ;;  %vm1329_vm2 = vcmp.eq.s32.totalorder %v1324_v38, 2 }
 0x17b   :  { %1819 = vadd.xlane.f32.xlu0 %v1818_v14  ;;  %v1328_v19 = vsel %vm1326_vm3, %v2600_v46, %v1327_v51  ;;  %v1331_v32 = vsel %vm1329_vm2, %v1330_v15, %v2602_v61  ;;  %v1831_v31 = vsel %vm1750_vm4, %v1827_v37, 0.0  ;;  %v1828_v16 = vmul.f32 %v3502_v60, %v1125_v1  ;;  %v36_v61 = vld [vmem:[#allocation2 + $0x18] sm:$0xff]  ;;  %v33_v15 = vld [vmem:[#allocation2] sm:$0xff] }
 0x17c   :  { %2498 = vmatmul.mubr.msk.f32.gmra.mrb[8].mxu1 %vm1750_vm4, %v1021_v11  ;;  %v1805_v63 = vsel %vm1750_vm4, %v1797_v20, 0.0  ;;  %vm1325_vm9 = vcmp.lt.s32.totalorder %v1324_v38, 2  ;;  %v1813_v3 = vmul.f32 %v1229_v2, %v1229_v2  ;;  %v1829_v41 = vmul.f32 %v3583_v0, %v1229_v2 }
 0x17d   :  { %2158 = vmatprep.mubr.f32.mxu1 %v2674_v22  ;;  %1761 = vadd.xlane.f32.xlu1 %v1760_v34  ;;  %v1332_v26 = vsel %vm1325_vm9, %v1328_v19, %v1331_v32  ;;  %v1834_v56 = vsel %vm1750_vm4, %v1828_v16, 0.0  ;;  %v1798_v33 = vmul.f32 %v1745_v24, %v1745_v24  ;;  %v1766_v0 = vmul.f32 %v3615_v44, %v3615_v44 }
 0x17e   :  { %v1333_v60 = vsel %vm1322_vm11, nan, %v1332_v26  ;;  %v1821_v28 = vsel %vm1750_vm4, %v1813_v3, 0.0  ;;  %v1837_v58 = vsel %vm1750_vm4, %v1829_v41, 0.0  ;;  %v2675_v47 = vmov 2  }
 0x17f   :  { %1806 = vadd.xlane.f32.xlu0 %v1805_v63  ;;  %v1830_v17 = vmul.f32 %v1745_v24, %v1333_v60  ;;  %v1808_v36 = vsel %vm1750_vm4, %v1798_v33, 0.0  ;;  %v1814_v8 = vmul.f32 %v1333_v60, %v1333_v60  ;;  %v1776_v29 = vsel %vm1750_vm4, %v1766_v0, 0.0  ;;  %2570 = vset.pattern.permute.xlu1 %v2675_v47 }
 0x180   :  { %2499 = vmatmul.mubr.msk.f32.gmra.mrb[10].mxu1 %vm1750_vm4, %v1125_v1  ;;  %2569 = vset.pattern.permute.xlu0 %v2675_v47  ;;  %v2510_v57 = vpack.c.bf16 %v36_v61, %v34_v27  ;;  %v2512_v13 = vpack.c.bf16 %v35_v35, %v33_v15  ;;  %v2611_v47 = vld [vmem:[%s3773_s0] sm:$0xff]  ;;  %vm2372_vm12 = vcmask 1041409   ;;  %vm2374_vm10 = vcmask 1042434  }
 0x181   :  { %2164 = vmatprep.mubr.f32.mxu1 %v2674_v22  ;;  %1832 = vadd.xlane.f32.xlu1 %v1831_v31  ;;  %v1840_v46 = vsel %vm1750_vm4, %v1830_v17, 0.0  ;;  %v1824_v11 = vsel %vm1750_vm4, %v1814_v8, 0.0  ;;  %vm2376_vm14 = vcmask 1043459   ;;  %vm2378_vm0 = vcmask 1044484  }
 0x182   :  { %2511 = vmatprep.subr.bf16.mxu0 %v2510_v57  ;;  %v2612_v57 = vld [vmem:[%s3773_s0 + $0x8] sm:$0xff]  ;;  %vm2380_vm5 = vcmask 1045509   ;;  %vm2382_vm8 = vcmask 1046534   ;;  %vm2384_vm6 = vcmask 1047559  }
 0x183   :  { %1822 = vadd.xlane.f32.xlu0 %v1821_v28  ;;  %2513 = vmatpush1.bf16.msra.mxu0 %v2512_v13 }
 0x184   :  { %2500 = vmatmul.mubr.msk.f32.gmra.mrb[12].mxu1 %vm1750_vm4, %v1229_v2 }
 0x185   :  { %2170 = vmatprep.mubr.f32.mxu1 %v2674_v22  ;;  %1835 = vadd.xlane.f32.xlu1 %v1834_v56 }
 0x187   :  { %1809 = vadd.xlane.f32.xlu0 %v1808_v36 }
 0x188   :  { %2501 = vmatmul.mubr.msk.f32.gmra.mrb[14].mxu1 %vm1750_vm4, %v1333_v60 }
 0x189   :  { %1838 = vadd.xlane.f32.xlu1 %v1837_v58 }
 0x18b   :  { %1777 = vadd.xlane.f32.xlu0 %v1776_v29 }
 0x18d   :  { %1841 = vadd.xlane.f32.xlu1 %v1840_v46 }
 0x191   :  { %1825 = vadd.xlane.f32.xlu1 %v1824_v11 }
 0x1cb   :  { %v1753_v51 = vpop.xlane.xlu0 %1752 }
 0x1cd   :  { %v1785_v23 = vpop.xlane.xlu1 %1784 }
 0x1ce   :  { %v1847_v21 = vmul.f32 2.0, %v1785_v23 }
 0x1d0   :  { %v1769_v30 = vpop.xlane.xlu0 %1768 }
 0x1d8   :  { %v1788_v45 = vpop.xlane.xlu1 %1787 }
 0x1d9   :  { %v1772_v39 = vpop.xlane.xlu0 %1771  ;;  %v1848_v4 = vmul.f32 2.0, %v1788_v45  ;;  %v2614_v45 = vld [vmem:[%s3773_s0 + $0x18] sm:$0xff] }
 0x1dc   :  { %v1756_v55 = vpop.xlane.xlu1 %1755 }
 0x1ed   :  { %v1791_v43 = vpop.xlane.xlu1 %1790 }
 0x1ee   :  { %v1775_v59 = vpop.xlane.xlu0 %1774  ;;  %v1849_v19 = vmul.f32 2.0, %v1791_v43 }
 0x1f1   :  { %v1759_v6 = vpop.xlane.xlu1 %1758 }
 0x1f2   :  { %v1801_v62 = vpop.xlane.xlu0 %1800 }
 0x1f3   :  { %v1843_v25 = vmul.f32 %v1801_v62, %v1753_v51  ;;  %v2613_v51 = vld [vmem:[%s3773_s0 + $0x10] sm:$0xff] }
 0x200   :  { %v1817_v48 = vpop.xlane.xlu0 %1816 }
 0x201   :  { %v1859_v10 = vmul.f32 %v1817_v48, %v1769_v30 }
 0x204   :  { %v1804_v24 = vpop.xlane.xlu0 %1803 }
 0x205   :  { %v1844_v37 = vmul.f32 %v1804_v24, %v1756_v55 }
 0x206   :  { %v1794_v1 = vpop.xlane.xlu1 %1793 }
 0x207   :  { %v1850_v41 = vmul.f32 2.0, %v1794_v1 }
 0x208   :  { %v1820_v9 = vpop.xlane.xlu0 %1819 }
 0x209   :  { %v1860_v32 = vmul.f32 %v1820_v9, %v1772_v39 }
 0x20a   :  { %v1762_v7 = vpop.xlane.xlu1 %1761 }
 0x20c   :  { %v1807_v42 = vpop.xlane.xlu0 %1806 }
 0x20d   :  { %v1845_v3 = vmul.f32 %v1807_v42, %v1759_v6 }
 0x20e   :  { %v1833_v12 = vpop.xlane.xlu1 %1832 }
 0x20f   :  { %v1851_v50 = vmul.f32 %v1847_v21, %v1833_v12 }
 0x210   :  { %v1823_v2 = vpop.xlane.xlu0 %1822 }
 0x211   :  { %v1855_v38 = vadd.f32 %v1851_v50, %v1843_v25  ;;  %v1861_v28 = vmul.f32 %v1823_v2, %v1775_v59 }
 0x212   :  { %v1836_v34 = vpop.xlane.xlu1 %1835 }
 0x213   :  { %v1863_v14 = vadd.f32 %v1859_v10, %v1855_v38  ;;  %v1852_v20 = vmul.f32 %v1848_v4, %v1836_v34 }
 0x214   :  { %v1810_v56 = vpop.xlane.xlu0 %1809 }
 0x215   :  { %2603 = vrsqrt.f32 %v1863_v14  ;;  %v1856_v31 = vadd.f32 %v1852_v20, %v1844_v37  ;;  %v1846_v36 = vmul.f32 %v1810_v56, %v1762_v7 }
 0x216   :  { %v1839_v16 = vpop.xlane.xlu1 %1838 }
 0x217   :  { %v1864_v63 = vadd.f32 %v1860_v32, %v1856_v31  ;;  %v1853_v26 = vmul.f32 %v1849_v19, %v1839_v16 }
 0x218   :  { %v1778_v0 = vpop.xlane.xlu0 %1777 }
 0x219   :  { %2605 = vrsqrt.f32 %v1864_v63  ;;  %v1857_v60 = vadd.f32 %v1853_v26, %v1845_v3 }
 0x21a   :  { %v1842_v33 = vpop.xlane.xlu1 %1841 }
 0x21b   :  { %v1865_v58 = vadd.f32 %v1861_v28, %v1857_v60  ;;  %v1854_v17 = vmul.f32 %v1850_v41, %v1842_v33 }
 0x21d   :  { %2607 = vrsqrt.f32 %v1865_v58  ;;  %v1858_v29 = vadd.f32 %v1854_v17, %v1846_v36 }
 0x21e   :  { %v1826_v46 = vpop.xlane.xlu1 %1825 }
 0x21f   :  { %v2604_v8 = vpop.eup %2603  ;;  %v1862_v11 = vmul.f32 %v1826_v46, %v1778_v0 }
 0x220   :  { %v1871_v27 = vmul.f32 %v2611_v47, %v2604_v8 }
 0x221   :  { %v1866_v61 = vadd.f32 %v1862_v11, %v1858_v29 }
 0x222   :  { %1877 = vperm.xlu0 %2569, %v1871_v27  }
 0x223   :  { %v2606_v15 = vpop.eup %2605  ;;  %2609 = vrsqrt.f32 %v1866_v61 }
 0x224   :  { %v1872_v35 = vmul.f32 %v2612_v57, %v2606_v15 }
 0x226   :  { %1882 = vperm.xlu1 %2570, %v1872_v35  }
 0x227   :  { %v2608_v13 = vpop.eup %2607 }
 0x228   :  { %v1873_v23 = vmul.f32 %v2613_v51, %v2608_v13 }
 0x22a   :  { %1887 = vperm.xlu1 %2570, %v1873_v23  }
 0x22d   :  { %v2610_v30 = vpop.eup %2609  ;;  %v2130_v55 = vpop.f32.mrb[0].mxu1 }
 0x22e   :  { %v1874_v39 = vmul.f32 %v2614_v45, %v2610_v30  ;;  %v2132_v59 = vpop.f32.mrb[1].mxu1 }
 0x230   :  { %1892 = vperm.xlu1 %2570, %v1874_v39  }
 0x233   :  { %v2136_v43 = vpop.f32.mrb[2].mxu1 }
 0x234   :  { %v2138_v62 = vpop.f32.mrb[3].mxu1 }
 0x241   :  { %v2142_v6 = vpop.f32.mrb[4].mxu1 }
 0x242   :  { %v2144_v48 = vpop.f32.mrb[5].mxu1 }
 0x24b   :  { %v2148_v1 = vpop.f32.mrb[6].mxu1 }
 0x24c   :  { %v2150_v24 = vpop.f32.mrb[7].mxu1 }
 0x24f   :  { %v2154_v7 = vpop.f32.mrb[8].mxu1 }
 0x250   :  { %v2156_v9 = vpop.f32.mrb[9].mxu1 }
 0x253   :  { %v2160_v21 = vpop.f32.mrb[10].mxu1 }
 0x254   :  { %v3679_v12 = vpop.f32.mrb[11].mxu1 }
 0x257   :  { %v3681_v25 = vpop.f32.mrb[12].mxu1 }
 0x258   :  { %v3683_v50 = vpop.f32.mrb[13].mxu1 }
 0x25b   :  { %v3685_v42 = vpop.f32.mrb[14].mxu1 }
 0x25c   :  { %v3687_v4 = vpop.f32.mrb[15].mxu1 }
 0x2a1   :  { %v1878_v10 = vpop.permute.xlu0 %1877 }
 0x2a2   :  { %v1895_v38 = vmul.f32 %v1878_v10, %v3296_v18 }
 0x2a4   :  { %2486 = vmatmul.mubr.msk.f32.vlgmr.msra.gmra.mrb[0].mxu0 %vm1750_vm4, %v1895_v38 }
 0x2a5   :  { %v1883_v34 = vpop.permute.xlu1 %1882  ;;  %1997 = vmatprep.mubr.f32.mxu0 %v2674_v22 }
 0x2a6   :  { %v1896_v37 = vmul.f32 %v1883_v34, %v3350_v5  ;;  %v1899_v5 = vmul.f32 %v1878_v10, %v3306_v40  ;;  %v1900_v19 = vmul.f32 %v1883_v34, %v3354_v49 }
 0x2a8   :  { %2487 = vmatmul.mubr.msk.f32.gmra.mrb[2].mxu0 %vm1750_vm4, %v1896_v37 }
 0x2a9   :  { %v1888_v14 = vpop.permute.xlu1 %1887  ;;  %2003 = vmatprep.mubr.f32.mxu0 %v2674_v22 }
 0x2aa   :  { %v1897_v20 = vmul.f32 %v1888_v14, %v3479_v52  ;;  %v1901_v52 = vmul.f32 %v1888_v14, %v3488_v54 }
 0x2ac   :  { %2488 = vmatmul.mubr.msk.f32.gmra.mrb[4].mxu0 %vm1750_vm4, %v1897_v20 }
 0x2ad   :  { %2009 = vmatprep.mubr.f32.mxu0 %v2674_v22 }
 0x2af   :  { %v1893_v2 = vpop.permute.xlu1 %1892 }
 0x2b0   :  { %v1898_v18 = vmul.f32 %v1893_v2, %v3611_v53  ;;  %v1902_v53 = vmul.f32 %v1893_v2, %v3615_v44 }
 0x2b2   :  { %2489 = vmatmul.mubr.msk.f32.gmra.mrb[6].mxu0 %vm1750_vm4, %v1898_v18 }
 0x2b3   :  { %2015 = vmatprep.mubr.f32.mxu0 %v2674_v22 }
 0x2b6   :  { %2490 = vmatmul.mubr.msk.f32.gmra.mrb[8].mxu0 %vm1750_vm4, %v1899_v5 }
 0x2b7   :  { %2021 = vmatprep.mubr.f32.mxu0 %v2674_v22 }
 0x2ba   :  { %2491 = vmatmul.mubr.msk.f32.gmra.mrb[10].mxu0 %vm1750_vm4, %v1900_v19 }
 0x2bb   :  { %2027 = vmatprep.mubr.f32.mxu0 %v2674_v22 }
 0x2be   :  { %2492 = vmatmul.mubr.msk.f32.gmra.mrb[12].mxu0 %vm1750_vm4, %v1901_v52 }
 0x2bf   :  { %2033 = vmatprep.mubr.f32.mxu0 %v2674_v22 }
 0x2c2   :  { %2493 = vmatmul.mubr.msk.f32.gmra.mrb[14].mxu0 %vm1750_vm4, %v1902_v53  ;;  %vm2241_vm4 = vcmask 1043456  }
 0x377   :  { %v1993_v40 = vpop.f32.mrb[0].mxu0 }
 0x378   :  { %v2177_v32 = vmul.f32 %v2130_v55, %v1993_v40  ;;  %v1995_v31 = vpop.f32.mrb[1].mxu0 }
 0x379   :  { %v2178_v16 = vmul.f32 %v2132_v59, %v1995_v31 }
 0x37b   :  { %v1999_v63 = vpop.f32.mrb[2].mxu0 }
 0x37c   :  { %v2179_v49 = vmul.f32 %v2136_v43, %v1999_v63  ;;  %v2001_v3 = vpop.f32.mrb[3].mxu0 }
 0x37d   :  { %v2180_v26 = vmul.f32 %v2138_v62, %v2001_v3 }
 0x37f   :  { %v2005_v56 = vpop.f32.mrb[4].mxu0 }
 0x380   :  { %v3712_v41 = vmul.f32 %v2142_v6, %v2005_v56  ;;  %v2007_v54 = vpop.f32.mrb[5].mxu0 }
 0x381   :  { %v3714_v60 = vmul.f32 %v2144_v48, %v2007_v54 }
 0x385   :  { %v2011_v28 = vpop.f32.mrb[6].mxu0 }
 0x386   :  { %v3716_v22 = vmul.f32 %v2148_v1, %v2011_v28  ;;  %v2013_v44 = vpop.f32.mrb[7].mxu0 }
 0x387   :  { %v3718_v33 = vmul.f32 %v2150_v24, %v2013_v44 }
 0x389   :  { %v2017_v58 = vpop.f32.mrb[8].mxu0 }
 0x38a   :  { %v2185_v17 = vmul.f32 %v2154_v7, %v2017_v58  ;;  %v2019_v36 = vpop.f32.mrb[9].mxu0 }
 0x38b   :  { %v2186_v0 = vmul.f32 %v2156_v9, %v2019_v36 }
 0x38c   :  { %v2193_v46 = vadd.f32 %v2185_v17, %v2177_v32 }
 0x38d   :  { %v2194_v8 = vadd.f32 %v2186_v0, %v2178_v16  ;;  %v2023_v29 = vpop.f32.mrb[10].mxu0 }
 0x38e   :  { %v2187_v11 = vmul.f32 %v2160_v21, %v2023_v29  ;;  %v2025_v47 = vpop.f32.mrb[11].mxu0 }
 0x38f   :  { %v2209_v27 = vcombine.low %v2193_v46, %v2194_v8  ;;  %v2210_v61 = vcombine.high %v2193_v46, %v2194_v8  ;;  %v2502_v15 = vcombine.low %v2194_v8, %v2194_v8  ;;  %v2503_v57 = vcombine.high %v2194_v8, %v2194_v8 }
 0x390   :  { %v2195_v35 = vadd.f32 %v2187_v11, %v2179_v49  ;;  %v2188_v13 = vmul.f32 %v3679_v12, %v2025_v47 }
 0x391   :  { %v2242_v51 = vsel %vm2241_vm4, %v2209_v27, 0.0  ;;  %v2249_v23 = vsel %vm2241_vm4, %v2502_v15, 0.0  ;;  %v2256_v30 = vsel %vm2241_vm4, %v2210_v61, 0.0  ;;  %v2263_v45 = vsel %vm2241_vm4, %v2503_v57, 0.0  ;;  %v2029_v39 = vpop.f32.mrb[12].mxu0 }
 0x392   :  { %v2243_v55 = vrot.slane %v2242_v51, 4  ;;  %v2250_v59 = vrot.slane %v2249_v23, 4  ;;  %v2257_v43 = vrot.slane %v2256_v30, 4  ;;  %v2264_v62 = vrot.slane %v2263_v45, 4  ;;  %v2031_v6 = vpop.f32.mrb[13].mxu0 }
 0x393   :  { %v2196_v48 = vadd.f32 %v2188_v13, %v2180_v26  ;;  %v2189_v1 = vmul.f32 %v3681_v25, %v2029_v39  ;;  %v2190_v24 = vmul.f32 %v3683_v50, %v2031_v6 }
 0x394   :  { %v2244_v7 = vadd.f32 %v2243_v55, %v2242_v51  ;;  %v2251_v9 = vadd.f32 %v2250_v59, %v2249_v23  ;;  %v2258_v21 = vadd.f32 %v2257_v43, %v2256_v30  ;;  %v2265_v12 = vadd.f32 %v2264_v62, %v2263_v45 }
 0x395   :  { %v2211_v10 = vcombine.low %v2195_v35, %v2196_v48  ;;  %v2212_v38 = vcombine.high %v2195_v35, %v2196_v48  ;;  %v2504_v34 = vcombine.low %v2196_v48, %v2196_v48  ;;  %v2505_v37 = vcombine.high %v2196_v48, %v2196_v48  ;;  %v2035_v14 = vpop.f32.mrb[14].mxu0 }
 0x396   :  { %v2245_v20 = vrot.slane %v2244_v7, 2  ;;  %v2252_v2 = vrot.slane %v2251_v9, 2  ;;  %v2259_v18 = vrot.slane %v2258_v21, 2  ;;  %v2266_v5 = vrot.slane %v2265_v12, 2  ;;  %v2037_v19 = vpop.f32.mrb[15].mxu0 }
 0x397   :  { %v2270_v52 = vsel %vm2241_vm4, %v2211_v10, 0.0  ;;  %v2277_v25 = vsel %vm2241_vm4, %v2504_v34, 0.0  ;;  %v2284_v50 = vsel %vm2241_vm4, %v2212_v38, 0.0  ;;  %v2291_v53 = vsel %vm2241_vm4, %v2505_v37, 0.0 }
 0x398   :  { %v2246_v40 = vadd.f32 %v2245_v20, %v2244_v7  ;;  %v2253_v32 = vadd.f32 %v2252_v2, %v2251_v9  ;;  %v2260_v31 = vadd.f32 %v2259_v18, %v2258_v21  ;;  %v2267_v16 = vadd.f32 %v2266_v5, %v2265_v12 }
 0x399   :  { %v2271_v63 = vrot.slane %v2270_v52, 4  ;;  %v2278_v49 = vrot.slane %v2277_v25, 4  ;;  %v2285_v3 = vrot.slane %v2284_v50, 4  ;;  %v2292_v26 = vrot.slane %v2291_v53, 4 }
 0x39a   :  { %v2247_v58 = vrot.slane %v2246_v40, 1  ;;  %v2254_v17 = vrot.slane %v2253_v32, 1  ;;  %v2261_v36 = vrot.slane %v2260_v31, 1  ;;  %v2268_v0 = vrot.slane %v2267_v16, 1 }
 0x39b   :  { %v2272_v56 = vadd.f32 %v2271_v63, %v2270_v52  ;;  %v2279_v54 = vadd.f32 %v2278_v49, %v2277_v25  ;;  %v2286_v28 = vadd.f32 %v2285_v3, %v2284_v50  ;;  %v2293_v44 = vadd.f32 %v2292_v26, %v2291_v53 }
 0x39c   :  { %v2197_v47 = vadd.f32 %v2189_v1, %v3712_v41  ;;  %v2198_v27 = vadd.f32 %v2190_v24, %v3714_v60  ;;  %v2191_v61 = vmul.f32 %v3685_v42, %v2035_v14  ;;  %v2192_v15 = vmul.f32 %v3687_v4, %v2037_v19 }
 0x39d   :  { %v2273_v46 = vrot.slane %v2272_v56, 2  ;;  %v2280_v8 = vrot.slane %v2279_v54, 2  ;;  %v2287_v29 = vrot.slane %v2286_v28, 2  ;;  %v2294_v11 = vrot.slane %v2293_v44, 2 }
 0x39e   :  { %v2213_v23 = vcombine.low %v2197_v47, %v2198_v27  ;;  %v2214_v30 = vcombine.high %v2197_v47, %v2198_v27  ;;  %v2506_v45 = vcombine.low %v2198_v27, %v2198_v27  ;;  %v2507_v39 = vcombine.high %v2198_v27, %v2198_v27 }
 0x39f   :  { %v2274_v57 = vadd.f32 %v2273_v46, %v2272_v56  ;;  %v2281_v35 = vadd.f32 %v2280_v8, %v2279_v54  ;;  %v2288_v13 = vadd.f32 %v2287_v29, %v2286_v28  ;;  %v2295_v51 = vadd.f32 %v2294_v11, %v2293_v44 }
 0x3a0   :  { %v2248_v55 = vadd.f32 %v2247_v58, %v2246_v40  ;;  %v2255_v59 = vadd.f32 %v2254_v17, %v2253_v32  ;;  %v2262_v43 = vadd.f32 %v2261_v36, %v2260_v31  ;;  %v2298_v41 = vsel %vm2241_vm4, %v2213_v23, 0.0 }
 0x3a1   :  { %v2275_v62 = vrot.slane %v2274_v57, 1  ;;  %v2305_v60 = vsel %vm2241_vm4, %v2506_v45, 0.0  ;;  %v2312_v42 = vsel %vm2241_vm4, %v2214_v30, 0.0  ;;  %v2319_v4 = vsel %vm2241_vm4, %v2507_v39, 0.0 }
 0x3a2   :  { %v2269_v6 = vadd.f32 %v2268_v0, %v2267_v16  ;;  %v2282_v48 = vrot.slane %v2281_v35, 1  ;;  %v2289_v1 = vrot.slane %v2288_v13, 1  ;;  %v2296_v24 = vrot.slane %v2295_v51, 1 }
 0x3a3   :  { %v2299_v7 = vrot.slane %v2298_v41, 4  ;;  %v2306_v9 = vrot.slane %v2305_v60, 4  ;;  %v2313_v21 = vrot.slane %v2312_v42, 4  ;;  %v2320_v12 = vrot.slane %v2319_v4, 4 }
 0x3a4   :  { %v2276_v10 = vadd.f32 %v2275_v62, %v2274_v57  ;;  %v2199_v38 = vadd.f32 %v2191_v61, %v3716_v22  ;;  %v2200_v34 = vadd.f32 %v2192_v15, %v3718_v33  ;;  %v2373_v37 = vsel %vm2372_vm12, %v2262_v43, %v2248_v55 }
 0x3a5   :  { %v2300_v14 = vadd.f32 %v2299_v7, %v2298_v41  ;;  %v2307_v20 = vadd.f32 %v2306_v9, %v2305_v60  ;;  %v2314_v2 = vadd.f32 %v2313_v21, %v2312_v42  ;;  %v2321_v18 = vadd.f32 %v2320_v12, %v2319_v4 }
 0x3a6   :  { %v2215_v5 = vcombine.low %v2199_v38, %v2200_v34  ;;  %v2216_v19 = vcombine.high %v2199_v38, %v2200_v34  ;;  %v2508_v52 = vcombine.low %v2200_v34, %v2200_v34  ;;  %v2509_v25 = vcombine.high %v2200_v34, %v2200_v34  ;;  %v2354_v34 = vld [vmem:[%s3774_s1] sm:$0xff] }
 0x3a7   :  { %v2301_v50 = vrot.slane %v2300_v14, 2  ;;  %v2308_v53 = vrot.slane %v2307_v20, 2  ;;  %v2315_v40 = vrot.slane %v2314_v2, 2  ;;  %v2322_v32 = vrot.slane %v2321_v18, 2 }
 0x3a8   :  { %v2326_v22 = vsel %vm2241_vm4, %v2215_v5, 0.0  ;;  %v2333_v33 = vsel %vm2241_vm4, %v2508_v52, 0.0  ;;  %v2340_v31 = vsel %vm2241_vm4, %v2216_v19, 0.0  ;;  %v2347_v16 = vsel %vm2241_vm4, %v2509_v25, 0.0 }
 0x3a9   :  { %v2302_v63 = vadd.f32 %v2301_v50, %v2300_v14  ;;  %v2309_v49 = vadd.f32 %v2308_v53, %v2307_v20  ;;  %v2316_v3 = vadd.f32 %v2315_v40, %v2314_v2  ;;  %v2323_v26 = vadd.f32 %v2322_v32, %v2321_v18 }
 0x3aa   :  { %v2327_v56 = vrot.slane %v2326_v22, 4  ;;  %v2334_v54 = vrot.slane %v2333_v33, 4  ;;  %v2341_v28 = vrot.slane %v2340_v31, 4  ;;  %v2348_v44 = vrot.slane %v2347_v16, 4 }
 0x3ab   :  { %v2283_v58 = vadd.f32 %v2282_v48, %v2281_v35  ;;  %v2290_v17 = vadd.f32 %v2289_v1, %v2288_v13  ;;  %v2303_v36 = vrot.slane %v2302_v63, 1  ;;  %v2310_v0 = vrot.slane %v2309_v49, 1 }
 0x3ac   :  { %v2328_v46 = vadd.f32 %v2327_v56, %v2326_v22  ;;  %v2335_v8 = vadd.f32 %v2334_v54, %v2333_v33  ;;  %v2342_v29 = vadd.f32 %v2341_v28, %v2340_v31  ;;  %v2349_v11 = vadd.f32 %v2348_v44, %v2347_v16 }
 0x3ad   :  { %v2297_v47 = vadd.f32 %v2296_v24, %v2295_v51  ;;  %v2317_v27 = vrot.slane %v2316_v3, 1  ;;  %v2324_v61 = vrot.slane %v2323_v26, 1  ;;  %v2386_v15 = vsel %vm2372_vm12, %v2269_v6, %v2255_v59 }
 0x3ae   :  { %v2329_v57 = vrot.slane %v2328_v46, 2  ;;  %v2336_v23 = vrot.slane %v2335_v8, 2  ;;  %v2343_v30 = vrot.slane %v2342_v29, 2  ;;  %v2350_v45 = vrot.slane %v2349_v11, 2 }
 0x3af   :  { %v2304_v39 = vadd.f32 %v2303_v36, %v2302_v63  ;;  %v2311_v55 = vadd.f32 %v2310_v0, %v2309_v49  ;;  %v2375_v35 = vsel %vm2374_vm10, %v2276_v10, %v2373_v37  ;;  %v2387_v13 = vsel %vm2374_vm10, %v2283_v58, %v2386_v15  ;;  %v2355_v37 = vld [vmem:[%s3774_s1 + $0x8] sm:$0xff]  ;;  %s2637_s1 = scalar_lea.vmem %s2410_s18, 256 }
 0x3b0   :  { %v2330_v43 = vadd.f32 %v2329_v57, %v2328_v46  ;;  %v2337_v62 = vadd.f32 %v2336_v23, %v2335_v8  ;;  %v2344_v41 = vadd.f32 %v2343_v30, %v2342_v29  ;;  %v2351_v60 = vadd.f32 %v2350_v45, %v2349_v11  ;;  %p2638_p8 = scmp.ne.s32.totalorder %s2410_s18, %s2637_s1  ;;  %p2643_p10 = scmp.lt.s32.totalorder %s2637_s1, %s2637_s1 }
 0x3b1   :  { %v2318_v42 = vadd.f32 %v2317_v27, %v2316_v3  ;;  %v2325_v51 = vadd.f32 %v2324_v61, %v2323_v26  ;;  %v2377_v4 = vsel %vm2376_vm14, %v2290_v17, %v2375_v35  ;;  %v2388_v59 = vsel %vm2376_vm14, %v2297_v47, %v2387_v13 }
 0x3b2   :  { %v2331_v6 = vrot.slane %v2330_v43, 1  ;;  %v2338_v48 = vrot.slane %v2337_v62, 1  ;;  %v2345_v1 = vrot.slane %v2344_v41, 1  ;;  %v2352_v24 = vrot.slane %v2351_v60, 1  ;;  %p2644_p11 = por %p2643_p10, %p2642_p9 }
 0x3b3   :  { %v2379_v7 = vsel %vm2378_vm0, %v2304_v39, %v2377_v4  ;;  %v2389_v9 = vsel %vm2378_vm0, %v2311_v55, %v2388_v59 }
 0x3b4   :  { %v2332_v21 = vadd.f32 %v2331_v6, %v2330_v43  ;;  %v2339_v12 = vadd.f32 %v2338_v48, %v2337_v62  ;;  %v2346_v10 = vadd.f32 %v2345_v1, %v2344_v41  ;;  %v2353_v38 = vadd.f32 %v2352_v24, %v2351_v60  ;;  %p2645_p12 = pnand %p2644_p11, %p2638_p8 }
 0x3b5   :  { %v2381_v14 = vsel %vm2380_vm5, %v2318_v42, %v2379_v7  ;;  %v2390_v20 = vsel %vm2380_vm5, %v2325_v51, %v2389_v9 }
 0x3b6   :  { %v2383_v2 = vsel %vm2382_vm8, %v2332_v21, %v2381_v14  ;;  %v2391_v18 = vsel %vm2382_vm8, %v2339_v12, %v2390_v20 }
 0x3b7   :  { %v2385_v5 = vsel %vm2384_vm6, %v2346_v10, %v2383_v2  ;;  %v2392_v19 = vsel %vm2384_vm6, %v2353_v38, %v2391_v18 }
 0x3b8   :  { %v2395_v52 = vadd.f32 %v2385_v5, %v2354_v34  ;;  %v2396_v25 = vadd.f32 %v2392_v19, %v2355_v37 }
 0x3ba   :  { %v2397_v50 = vmax.f32 %v2395_v52, 0.0  ;;  %v2398_v53 = vmax.f32 %v2396_v25, 0.0 }
 0x3bc   :  { %v2399_v40 = vmin.f32 %v2397_v50, 1.0  ;;  %v2400_v32 = vmin.f32 %v2398_v53, 1.0 }
 0x3be   :  { %2401 = vst [vmem:[#allocation5] sm:$0xff] %v2399_v40  ;;  %2402 = vst [vmem:[#allocation5 + $0x8] sm:$0xff] %v2400_v32 }
 0x3bf   :  { %2648 = shalt.err (!%p2645_p12)
}
 0x3c0   :  { %s2649_s21 = scalar_lea.hbm %s3776_s3, 256 }
 0x3c1   :  { %p2650_p13 = scmp.ne.s32.totalorder %s3776_s3, %s2649_s21  ;;  %p2653_p0 = scmp.lt.u32.totalorder %s2649_s21, %s3776_s3 }
 0x3c3   :  { %p2655_p1 = pnand %p2653_p0, %p2650_p13 }
 0x3c5   :  { %2658 = shalt.err (!%p2655_p1)
}
 0x3c6   :  { %2412 = dma.vmem_to_hbm [thread:$0]  %s2410_s18, 256, %s3776_s3, [#allocation4]  }
 0x3c7   :  { %2661 = dma.done.wait [#allocation4], 256  }
 0x3c8   :  { %2662 = vsyncadd [#allocation4], 4294967040 }
 0x3c9   :  { %2416 = vsyncpa [#allocation3], 1 }
 0x3ca   :  { %2417 = vsyncpa [#allocation4], 1 }

</bundles_post_ra>
